<compile_context>
chip_gen: v7x
topology: tpu7x:2x2x1
jax: 0.10.0
libtpu: 0.0.40
codegen_flags: <defaults>
</compile_context>

<pallas_src>
import functools

import jax
import jax.numpy as jnp
from jax.experimental import pallas as pl
from jax.experimental.pallas import tpu as pltpu

EPS = 1e-5                        # torch.nn.LayerNorm default
LANE = 128
TARGET_ROWS = 512                 # >= 2x the 256x256 MXU M dim per grid step
TILE_BUDGET = 40 * 1024 * 1024    # per-tile working-set cap (fits v7x 64 MiB)


# ------------------------------- kernel -------------------------------------

def _normalize(x, inv_d):
    # LayerNorm statistics over the REAL feature count (padded lanes are zero),
    # E[x^2] - mu^2 form so zero lane-padding never needs masking; clamp at 0
    # so catastrophic cancellation can't feed a negative into rsqrt.
    mu = jnp.sum(x, axis=-1, keepdims=True) * inv_d
    var = jnp.sum(x * x, axis=-1, keepdims=True) * inv_d - mu * mu
    var = jnp.maximum(var, 0.0)
    return (x - mu) * jax.lax.rsqrt(var + EPS)


def transformer_layer_kernel(x_ref,
                             cross_wqkv_ref, cross_bqkv_ref, cross_wo_ref,
                             self_wqkv_ref, self_bqkv_ref, self_wo_ref,
                             lin_w_ref, final_ref,
                             out_ref, *, d_real, h_pad):
    bb, seq, d_pad = x_ref.shape
    rows = bb * seq
    inv_d = 1.0 / d_real

    def attention(x, wqkv_ref, bqkv_ref, wo_ref):
        # Pre-LN stats once; gamma/beta and the 1/sqrt(H) scale are already
        # folded into the q/k/v weights and biases by the wrapper.
        xh = _normalize(x, inv_d).astype(jnp.bfloat16)                  # (rows, Dp)

        def proj(col):
            # Static 128-lane slice of the fused weight (free Ref view); bias
            # added per-slice, result cast to bf16 immediately so the largest
            # live f32 intermediate is (rows, Hp) rather than (rows, 3Hp).
            w = wqkv_ref[:, col * h_pad:(col + 1) * h_pad]              # (Dp, Hp) bf16
            b = bqkv_ref[col:col + 1, :]                                # (1, Hp) f32
            y = jnp.dot(xh, w, preferred_element_type=jnp.float32) + b
            return y.astype(jnp.bfloat16).reshape(bb, seq, h_pad)

        q, k, v = proj(0), proj(1), proj(2)
        # Note: for S < 128 these batched matmuls underfill the MXU; fine for
        # the reference config, and the issue vanishes at realistic seq lens.
        s = jnp.einsum("bqh,bkh->bqk", q, k,
                       preferred_element_type=jnp.float32)              # (bb, S, S)
        s = s - jnp.max(s, axis=-1, keepdims=True)
        p = jnp.exp(s)
        # approx reciprocal (EUP slot): softmax rows sum to 1 only to ~1e-3.
        p = p * pl.reciprocal(jnp.sum(p, axis=-1, keepdims=True), approx=True)
        o = jnp.einsum("bqk,bkh->bqh", p.astype(jnp.bfloat16), v,
                       preferred_element_type=jnp.float32)              # (bb, S, Hp)
        o = o.reshape(rows, h_pad).astype(jnp.bfloat16)
        out = jnp.dot(o, wo_ref[...], preferred_element_type=jnp.float32)
        return x + out                                                   # residual

    x = x_ref[...].reshape(rows, d_pad)                                  # f32
    x = attention(x, cross_wqkv_ref, cross_bqkv_ref, cross_wo_ref)       # cross attn
    x = attention(x, self_wqkv_ref, self_bqkv_ref, self_wo_ref)          # self attn
    # x = LayerNorm(x + Linear(x)); final rows: [lin bias, LN gamma, LN beta]
    lin = jnp.dot(x.astype(jnp.bfloat16), lin_w_ref[...],
                  preferred_element_type=jnp.float32) + final_ref[0:1, :]
    y = _normalize(x + lin, inv_d) * final_ref[1:2, :] + final_ref[2:3, :]
    out_ref[...] = y.reshape(bb, seq, d_pad)


# ------------------------------- wrapper -------------------------------------

def _pad_to(a, shape):
    pads = [(0, t - s) for s, t in zip(a.shape, shape)]
    return jnp.pad(a, pads)


def _fused_qkv(ln, wq, wk, wv, scale, d_pad, h_pad):
    """Fold LN gamma/beta + softmax scale into a (Dp, 3Hp) weight and (3, Hp) bias."""
    gq, bq, gk, bk, gv, bv = ln[0], ln[1], ln[2], ln[3], ln[4], ln[5]
    w_q = (gq[:, None] * wq) * scale
    w_k = gk[:, None] * wk
    w_v = gv[:, None] * wv
    b_q = (bq @ wq) * scale
    b_k = bk @ wk
    b_v = bv @ wv
    w = jnp.concatenate([_pad_to(w_q, (d_pad, h_pad)),
                         _pad_to(w_k, (d_pad, h_pad)),
                         _pad_to(w_v, (d_pad, h_pad))], axis=1)
    b = jnp.stack([_pad_to(b_q, (h_pad,)),
                   _pad_to(b_k, (h_pad,)),
                   _pad_to(b_v, (h_pad,))], axis=0)
    return w.astype(jnp.bfloat16), b.astype(jnp.float32)


def _tile_working_set_bytes(bb, S, Dp, Hp):
    rows = bb * S
    io = 2 * 2 * rows * Dp * 4             # x + out tiles, double-buffered, f32
    inter = rows * (3 * Dp + 3 * Hp) * 4   # rough bound on live f32 intermediates
    scores = 2 * bb * S * S * 4            # scores + probs
    return io + inter + scores


def _choose_batch_block(B, S, Dp, Hp):
    # Whole sequences per block (attention is within-sequence).  Aim for
    # ~TARGET_ROWS rows per grid step, shrink until the working set fits the
    # budget (sized for v7x's 64 MiB VMEM; v5e/v6e have 128 MiB).
    bb = max(1, min(B, pl.cdiv(TARGET_ROWS, S)))
    while bb > 1 and _tile_working_set_bytes(bb, S, Dp, Hp) > TILE_BUDGET:
        bb = (bb + 1) // 2
    return bb


def transformer_layer(query, params, *, scale):
    B, S, D = query.shape
    H = params["cross_wq"].shape[1]
    Dp = pl.cdiv(D, LANE) * LANE          # lane-dense feature dim
    Hp = pl.cdiv(H, LANE) * LANE          # lane-dense hidden dim

    cross_wqkv, cross_bqkv = _fused_qkv(
        params["cross_ln"], params["cross_wq"], params["cross_wk"],
        params["cross_wv"], scale, Dp, Hp)
    self_wqkv, self_bqkv = _fused_qkv(
        params["self_ln"], params["self_wq"], params["self_wk"],
        params["self_wv"], scale, Dp, Hp)
    cross_wo = _pad_to(params["cross_wo"], (Hp, Dp)).astype(jnp.bfloat16)
    self_wo = _pad_to(params["self_wo"], (Hp, Dp)).astype(jnp.bfloat16)
    lin_w = _pad_to(params["lin_w"], (Dp, Dp)).astype(jnp.bfloat16)
    final = _pad_to(params["final"], (3, Dp)).astype(jnp.float32)

    # --- tiling: grid over batch, whole sequences per block ---
    bb = _choose_batch_block(B, S, Dp, Hp)
    nb = pl.cdiv(B, bb)
    Bp = nb * bb                           # pad batch so the block divides evenly
    x = _pad_to(query.astype(jnp.float32), (Bp, S, Dp))

    # Scoped-VMEM limit derived from the actual tile/weight arithmetic; clamp
    # to 3/4 of physical VMEM (64 MiB v7x, 128 MiB v5e/v6e) with a 32 MiB floor.
    weight_bytes = ((2 * Dp * 3 * Hp + 2 * Hp * Dp + Dp * Dp) * 2
                    + (2 * 3 * Hp + 3 * Dp) * 4)
    try:
        vmem_cap = pltpu.get_tpu_info().vmem_capacity_bytes
    except Exception:
        vmem_cap = 64 * 1024 * 1024        # conservative fallback = v7x
    need = 3 * (weight_bytes + _tile_working_set_bytes(bb, S, Dp, Hp)) // 2
    vmem_limit = int(min(max(need, 32 * 1024 * 1024), 3 * vmem_cap // 4))

    kernel = functools.partial(transformer_layer_kernel, d_real=D, h_pad=Hp)
    const2 = lambda i: (0, 0)              # weights: DMA'd once, VMEM-resident

    out = pl.pallas_call(
        kernel,
        out_shape=jax.ShapeDtypeStruct((Bp, S, Dp), jnp.float32),
        grid_spec=pltpu.PrefetchScalarGridSpec(
            num_scalar_prefetch=0,
            grid=(nb,),
            in_specs=[
                pl.BlockSpec((bb, S, Dp), lambda i: (i, 0, 0)),   # x (pipelined)
                pl.BlockSpec((Dp, 3 * Hp), const2),               # cross fused QKV W
                pl.BlockSpec((3, Hp), const2),                    # cross fused QKV b
                pl.BlockSpec((Hp, Dp), const2),                   # cross Wo
                pl.BlockSpec((Dp, 3 * Hp), const2),               # self fused QKV W
                pl.BlockSpec((3, Hp), const2),                    # self fused QKV b
                pl.BlockSpec((Hp, Dp), const2),                   # self Wo
                pl.BlockSpec((Dp, Dp), const2),                   # final linear W
                pl.BlockSpec((3, Dp), const2),                    # [lin bias; gamma; beta]
            ],
            out_specs=pl.BlockSpec((bb, S, Dp), lambda i: (i, 0, 0)),
        ),
        compiler_params=pltpu.CompilerParams(
            # batch-tile axis is fully independent -> shard across v7x's 2 TCs
            dimension_semantics=("parallel",),
            vmem_limit_bytes=vmem_limit,
        ),
    )(x, cross_wqkv, cross_bqkv, cross_wo,
      self_wqkv, self_bqkv, self_wo, lin_w, final)

    # Tuning notes: if profiles show exposed input DMA, add
    # pipeline_mode=pl.Buffered(3) on the x BlockSpec; if downstream tolerates
    # bf16, emit the output as bf16 to halve the writeback stream (v5e win).
    return out[:B, :, :D]


# ------------------------- pure-JAX f32 reference ----------------------------

def _layer_norm(x, gamma, beta):
    mu = jnp.mean(x, axis=-1, keepdims=True)
    var = jnp.mean((x - mu) ** 2, axis=-1, keepdims=True)
    return (x - mu) * jax.lax.rsqrt(var + EPS) * gamma + beta


def _ref_attention(x, ln, wq, wk, wv, wo, scale):
    q = _layer_norm(x, ln[0], ln[1]) @ wq
    k = _layer_norm(x, ln[2], ln[3]) @ wk
    v = _layer_norm(x, ln[4], ln[5]) @ wv
    s = jnp.einsum("bid,bjd->bij", q, k) * scale
    p = jax.nn.softmax(s, axis=-1)
    o = jnp.einsum("bij,bjd->bid", p, v)
    return x + o @ wo


def transformer_layer_ref(query, params, *, scale):
    x = _ref_attention(query, params["cross_ln"], params["cross_wq"],
                       params["cross_wk"], params["cross_wv"],
                       params["cross_wo"], scale)
    x = _ref_attention(x, params["self_ln"], params["self_wq"],
                       params["self_wk"], params["self_wv"],
                       params["self_wo"], scale)
    lin = x @ params["lin_w"] + params["final"][0]
    return _layer_norm(x + lin, params["final"][1], params["final"][2])


# ------------------------------- params --------------------------------------

def init_params(key, D, H):
    ks = jax.random.split(key, 10)
    u = lambda k, shp, s: jax.random.uniform(k, shp, jnp.float32, -s, s)
    bound_qk = 1.0 / jnp.sqrt(D)
    bound_o = 1.0 / jnp.sqrt(H)

    def ln_params():
        # torch init_weight on LayerNorm: weight=1, bias=0
        return jnp.concatenate([jnp.ones((1, D)), jnp.zeros((1, D))] * 3, axis=0)

    return {
        "cross_ln": ln_params(),
        "cross_wq": u(ks[0], (D, H), bound_qk),
        "cross_wk": u(ks[1], (D, H), bound_qk),
        "cross_wv": u(ks[2], (D, H), bound_qk),
        "cross_wo": u(ks[3], (H, D), bound_o),
        "self_ln": ln_params(),
        "self_wq": u(ks[4], (D, H), bound_qk),
        "self_wk": u(ks[5], (D, H), bound_qk),
        "self_wv": u(ks[6], (D, H), bound_qk),
        "self_wo": u(ks[7], (H, D), bound_o),
        "lin_w": u(ks[8], (D, D), bound_qk),
        # final block: row0 = linear bias, row1 = LN gamma, row2 = LN beta
        "final": jnp.concatenate(
            [u(ks[9], (1, D), bound_qk), jnp.ones((1, D)), jnp.zeros((1, D))],
            axis=0),
    }


if __name__ == "__main__":
    B, S, D, H = 2, 8, 16, 32          # batch, seq, input_dim, hidden_dim
    scale = 1.0 / (H ** 0.5)

    key = jax.random.PRNGKey(0)
    k_x, k_p = jax.random.split(key)
    query = jax.random.normal(k_x, (B, S, D), jnp.float32)
    params = init_params(k_p, D, H)

    out = jax.block_until_ready(transformer_layer(query, params, scale=scale))
    ref = transformer_layer_ref(query, params, scale=scale)

    assert out.shape == (B, S, D)
    # bf16 matmul operands + approx reciprocal => modest numerical drift vs f32
    max_err = float(jnp.max(jnp.abs(out - ref)))
    assert jnp.allclose(out, ref, atol=5e-2, rtol=5e-2), \
        f"mismatch vs JAX reference (max abs err {max_err})"

    print("KERNEL_OK")
</pallas_src>

<mosaic_0001>
module attributes {stable_mosaic.version = 11 : i64} {
  func.func @transformer_layer_kernel(%arg0: i32, %arg1: memref<2x8x128xf32, #tpu.memory_space<vmem>>, %arg2: memref<128x384xbf16, #tpu.memory_space<vmem>>, %arg3: memref<3x128xf32, #tpu.memory_space<vmem>>, %arg4: memref<128x128xbf16, #tpu.memory_space<vmem>>, %arg5: memref<128x384xbf16, #tpu.memory_space<vmem>>, %arg6: memref<3x128xf32, #tpu.memory_space<vmem>>, %arg7: memref<128x128xbf16, #tpu.memory_space<vmem>>, %arg8: memref<128x128xbf16, #tpu.memory_space<vmem>>, %arg9: memref<3x128xf32, #tpu.memory_space<vmem>>, %arg10: memref<2x8x128xf32, #tpu.memory_space<vmem>>) attributes {dimension_semantics = [#tpu.dimension_semantics<parallel>], iteration_bounds = array<i64: 1>, scalar_prefetch = 0 : i64, scratch_operands = 0 : i64, tpu.core_type = #tpu.core_type<tc>, window_params = [{transform_indices = @transform_0, window_bounds = array<i64: 2, 8, 128>}, {pipeline_mode = #tpu.pipeline_mode<synchronous>, transform_indices = @transform_1, window_bounds = array<i64: 128, 384>}, {pipeline_mode = #tpu.pipeline_mode<synchronous>, transform_indices = @transform_2, window_bounds = array<i64: 3, 128>}, {pipeline_mode = #tpu.pipeline_mode<synchronous>, transform_indices = @transform_3, window_bounds = array<i64: 128, 128>}, {pipeline_mode = #tpu.pipeline_mode<synchronous>, transform_indices = @transform_4, window_bounds = array<i64: 128, 384>}, {pipeline_mode = #tpu.pipeline_mode<synchronous>, transform_indices = @transform_5, window_bounds = array<i64: 3, 128>}, {pipeline_mode = #tpu.pipeline_mode<synchronous>, transform_indices = @transform_6, window_bounds = array<i64: 128, 128>}, {pipeline_mode = #tpu.pipeline_mode<synchronous>, transform_indices = @transform_7, window_bounds = array<i64: 128, 128>}, {pipeline_mode = #tpu.pipeline_mode<synchronous>, transform_indices = @transform_8, window_bounds = array<i64: 3, 128>}, {transform_indices = @transform_9, window_bounds = array<i64: 2, 8, 128>}]} {
    %c0 = arith.constant 0 : index
    %c0_0 = arith.constant 0 : index
    %c0_1 = arith.constant 0 : index
    %0 = vector.load %arg1[%c0, %c0_0, %c0_1] : memref<2x8x128xf32, #tpu.memory_space<vmem>>, vector<2x8x128xf32>
    %1 = vector.shape_cast %0 : vector<2x8x128xf32> to vector<16x128xf32>
    %cst = arith.constant dense<0.000000e+00> : vector<16xf32>
    %2 = vector.multi_reduction <add>, %1, %cst [1] : vector<16x128xf32> to vector<16xf32>
    %3 = vector.shape_cast %2 : vector<16xf32> to vector<16x1xf32>
    %cst_2 = arith.constant 6.250000e-02 : f32
    %4 = vector.broadcast %cst_2 : f32 to vector<16x1xf32>
    %5 = arith.mulf %3, %4 : vector<16x1xf32>
    %6 = arith.mulf %1, %1 : vector<16x128xf32>
    %cst_3 = arith.constant dense<0.000000e+00> : vector<16xf32>
    %7 = vector.multi_reduction <add>, %6, %cst_3 [1] : vector<16x128xf32> to vector<16xf32>
    %8 = vector.shape_cast %7 : vector<16xf32> to vector<16x1xf32>
    %cst_4 = arith.constant 6.250000e-02 : f32
    %9 = vector.broadcast %cst_4 : f32 to vector<16x1xf32>
    %10 = arith.mulf %8, %9 : vector<16x1xf32>
    %11 = arith.mulf %5, %5 : vector<16x1xf32>
    %12 = arith.subf %10, %11 : vector<16x1xf32>
    %cst_5 = arith.constant 0.000000e+00 : f32
    %13 = vector.broadcast %cst_5 : f32 to vector<16x1xf32>
    %14 = arith.maximumf %12, %13 : vector<16x1xf32>
    %15 = vector.broadcast %5 : vector<16x1xf32> to vector<16x128xf32>
    %16 = arith.subf %1, %15 : vector<16x128xf32>
    %cst_6 = arith.constant 9.99999974E-6 : f32
    %17 = vector.broadcast %cst_6 : f32 to vector<16x1xf32>
    %18 = arith.addf %14, %17 : vector<16x1xf32>
    %19 = math.rsqrt %18 : vector<16x1xf32>
    %20 = vector.broadcast %19 : vector<16x1xf32> to vector<16x128xf32>
    %21 = arith.mulf %16, %20 : vector<16x128xf32>
    %22 = arith.truncf %21 : vector<16x128xf32> to vector<16x128xbf16>
    %c0_7 = arith.constant 0 : index
    %c0_8 = arith.constant 0 : index
    %23 = vector.load %arg2[%c0_7, %c0_8] : memref<128x384xbf16, #tpu.memory_space<vmem>>, vector<128x128xbf16>
    %c0_9 = arith.constant 0 : index
    %c0_10 = arith.constant 0 : index
    %24 = vector.load %arg3[%c0_9, %c0_10] : memref<3x128xf32, #tpu.memory_space<vmem>>, vector<1x128xf32>
    %cst_11 = arith.constant dense<0.000000e+00> : vector<16x128xf32>
    %25 = tpu.matmul %22, %23, %cst_11 {dimension_numbers = #tpu.dot_dimension_numbers<[1], [0], [0], [1], [0, 0, 1, 1], [], []>} : vector<16x128xbf16>, vector<128x128xbf16>, vector<16x128xf32> -> vector<16x128xf32>
    %26 = vector.broadcast %24 : vector<1x128xf32> to vector<16x128xf32>
    %27 = arith.addf %25, %26 : vector<16x128xf32>
    %28 = arith.truncf %27 : vector<16x128xf32> to vector<16x128xbf16>
    %29 = vector.shape_cast %28 : vector<16x128xbf16> to vector<2x8x128xbf16>
    %c0_12 = arith.constant 0 : index
    %c128 = arith.constant 128 : index
    %30 = vector.load %arg2[%c0_12, %c128] : memref<128x384xbf16, #tpu.memory_space<vmem>>, vector<128x128xbf16>
    %c1 = arith.constant 1 : index
    %c0_13 = arith.constant 0 : index
    %31 = vector.load %arg3[%c1, %c0_13] : memref<3x128xf32, #tpu.memory_space<vmem>>, vector<1x128xf32>
    %cst_14 = arith.constant dense<0.000000e+00> : vector<16x128xf32>
    %32 = tpu.matmul %22, %30, %cst_14 {dimension_numbers = #tpu.dot_dimension_numbers<[1], [0], [0], [1], [0, 0, 1, 1], [], []>} : vector<16x128xbf16>, vector<128x128xbf16>, vector<16x128xf32> -> vector<16x128xf32>
    %33 = vector.broadcast %31 : vector<1x128xf32> to vector<16x128xf32>
    %34 = arith.addf %32, %33 : vector<16x128xf32>
    %35 = arith.truncf %34 : vector<16x128xf32> to vector<16x128xbf16>
    %36 = vector.shape_cast %35 : vector<16x128xbf16> to vector<2x8x128xbf16>
    %c0_15 = arith.constant 0 : index
    %c256 = arith.constant 256 : index
    %37 = vector.load %arg2[%c0_15, %c256] : memref<128x384xbf16, #tpu.memory_space<vmem>>, vector<128x128xbf16>
    %c2 = arith.constant 2 : index
    %c0_16 = arith.constant 0 : index
    %38 = vector.load %arg3[%c2, %c0_16] : memref<3x128xf32, #tpu.memory_space<vmem>>, vector<1x128xf32>
    %cst_17 = arith.constant dense<0.000000e+00> : vector<16x128xf32>
    %39 = tpu.matmul %22, %37, %cst_17 {dimension_numbers = #tpu.dot_dimension_numbers<[1], [0], [0], [1], [0, 0, 1, 1], [], []>} : vector<16x128xbf16>, vector<128x128xbf16>, vector<16x128xf32> -> vector<16x128xf32>
    %40 = vector.broadcast %38 : vector<1x128xf32> to vector<16x128xf32>
    %41 = arith.addf %39, %40 : vector<16x128xf32>
    %42 = arith.truncf %41 : vector<16x128xf32> to vector<16x128xbf16>
    %43 = vector.shape_cast %42 : vector<16x128xbf16> to vector<2x8x128xbf16>
    "tpu.trace_start"() <{level = 10 : i32, message = "bqh,bkh->bqk"}> : () -> ()
    %cst_18 = arith.constant dense<0.000000e+00> : vector<2x8x8xf32>
    %44 = tpu.matmul %29, %36, %cst_18 {dimension_numbers = #tpu.dot_dimension_numbers<[2], [2], [1], [1], [0, 0, 0, 1, 1, 1], [0], [0]>} : vector<2x8x128xbf16>, vector<2x8x128xbf16>, vector<2x8x8xf32> -> vector<2x8x8xf32>
    "tpu.trace_stop"() : () -> ()
    %cst_19 = arith.constant dense<0xFF800000> : vector<2x8xf32>
    %45 = vector.multi_reduction <maximumf>, %44, %cst_19 [2] : vector<2x8x8xf32> to vector<2x8xf32>
    %46 = vector.shape_cast %45 : vector<2x8xf32> to vector<2x8x1xf32>
    %47 = vector.broadcast %46 : vector<2x8x1xf32> to vector<2x8x8xf32>
    %48 = arith.subf %44, %47 : vector<2x8x8xf32>
    %49 = math.exp %48 : vector<2x8x8xf32>
    %cst_20 = arith.constant dense<0.000000e+00> : vector<2x8xf32>
    %50 = vector.multi_reduction <add>, %49, %cst_20 [2] : vector<2x8x8xf32> to vector<2x8xf32>
    %51 = vector.shape_cast %50 : vector<2x8xf32> to vector<2x8x1xf32>
    %52 = tpu.reciprocal %51 {approx = true} : vector<2x8x1xf32> -> vector<2x8x1xf32>
    %53 = vector.broadcast %52 : vector<2x8x1xf32> to vector<2x8x8xf32>
    %54 = arith.mulf %49, %53 : vector<2x8x8xf32>
    %55 = arith.truncf %54 : vector<2x8x8xf32> to vector<2x8x8xbf16>
    "tpu.trace_start"() <{level = 10 : i32, message = "bqk,bkh->bqh"}> : () -> ()
    %cst_21 = arith.constant dense<0.000000e+00> : vector<2x8x128xf32>
    %56 = tpu.matmul %55, %43, %cst_21 {dimension_numbers = #tpu.dot_dimension_numbers<[2], [1], [1], [2], [0, 0, 0, 1, 1, 2], [0], [0]>} : vector<2x8x8xbf16>, vector<2x8x128xbf16>, vector<2x8x128xf32> -> vector<2x8x128xf32>
    "tpu.trace_stop"() : () -> ()
    %57 = vector.shape_cast %56 : vector<2x8x128xf32> to vector<16x128xf32>
    %58 = arith.truncf %57 : vector<16x128xf32> to vector<16x128xbf16>
    %c0_22 = arith.constant 0 : index
    %c0_23 = arith.constant 0 : index
    %59 = vector.load %arg4[%c0_22, %c0_23] : memref<128x128xbf16, #tpu.memory_space<vmem>>, vector<128x128xbf16>
    %cst_24 = arith.constant dense<0.000000e+00> : vector<16x128xf32>
    %60 = tpu.matmul %58, %59, %cst_24 {dimension_numbers = #tpu.dot_dimension_numbers<[1], [0], [0], [1], [0, 0, 1, 1], [], []>} : vector<16x128xbf16>, vector<128x128xbf16>, vector<16x128xf32> -> vector<16x128xf32>
    %61 = arith.addf %1, %60 : vector<16x128xf32>
    %cst_25 = arith.constant dense<0.000000e+00> : vector<16xf32>
    %62 = vector.multi_reduction <add>, %61, %cst_25 [1] : vector<16x128xf32> to vector<16xf32>
    %63 = vector.shape_cast %62 : vector<16xf32> to vector<16x1xf32>
    %cst_26 = arith.constant 6.250000e-02 : f32
    %64 = vector.broadcast %cst_26 : f32 to vector<16x1xf32>
    %65 = arith.mulf %63, %64 : vector<16x1xf32>
    %66 = arith.mulf %61, %61 : vector<16x128xf32>
    %cst_27 = arith.constant dense<0.000000e+00> : vector<16xf32>
    %67 = vector.multi_reduction <add>, %66, %cst_27 [1] : vector<16x128xf32> to vector<16xf32>
    %68 = vector.shape_cast %67 : vector<16xf32> to vector<16x1xf32>
    %cst_28 = arith.constant 6.250000e-02 : f32
    %69 = vector.broadcast %cst_28 : f32 to vector<16x1xf32>
    %70 = arith.mulf %68, %69 : vector<16x1xf32>
    %71 = arith.mulf %65, %65 : vector<16x1xf32>
    %72 = arith.subf %70, %71 : vector<16x1xf32>
    %cst_29 = arith.constant 0.000000e+00 : f32
    %73 = vector.broadcast %cst_29 : f32 to vector<16x1xf32>
    %74 = arith.maximumf %72, %73 : vector<16x1xf32>
    %75 = vector.broadcast %65 : vector<16x1xf32> to vector<16x128xf32>
    %76 = arith.subf %61, %75 : vector<16x128xf32>
    %cst_30 = arith.constant 9.99999974E-6 : f32
    %77 = vector.broadcast %cst_30 : f32 to vector<16x1xf32>
    %78 = arith.addf %74, %77 : vector<16x1xf32>
    %79 = math.rsqrt %78 : vector<16x1xf32>
    %80 = vector.broadcast %79 : vector<16x1xf32> to vector<16x128xf32>
    %81 = arith.mulf %76, %80 : vector<16x128xf32>
    %82 = arith.truncf %81 : vector<16x128xf32> to vector<16x128xbf16>
    %c0_31 = arith.constant 0 : index
    %c0_32 = arith.constant 0 : index
    %83 = vector.load %arg5[%c0_31, %c0_32] : memref<128x384xbf16, #tpu.memory_space<vmem>>, vector<128x128xbf16>
    %c0_33 = arith.constant 0 : index
    %c0_34 = arith.constant 0 : index
    %84 = vector.load %arg6[%c0_33, %c0_34] : memref<3x128xf32, #tpu.memory_space<vmem>>, vector<1x128xf32>
    %cst_35 = arith.constant dense<0.000000e+00> : vector<16x128xf32>
    %85 = tpu.matmul %82, %83, %cst_35 {dimension_numbers = #tpu.dot_dimension_numbers<[1], [0], [0], [1], [0, 0, 1, 1], [], []>} : vector<16x128xbf16>, vector<128x128xbf16>, vector<16x128xf32> -> vector<16x128xf32>
    %86 = vector.broadcast %84 : vector<1x128xf32> to vector<16x128xf32>
    %87 = arith.addf %85, %86 : vector<16x128xf32>
    %88 = arith.truncf %87 : vector<16x128xf32> to vector<16x128xbf16>
    %89 = vector.shape_cast %88 : vector<16x128xbf16> to vector<2x8x128xbf16>
    %c0_36 = arith.constant 0 : index
    %c128_37 = arith.constant 128 : index
    %90 = vector.load %arg5[%c0_36, %c128_37] : memref<128x384xbf16, #tpu.memory_space<vmem>>, vector<128x128xbf16>
    %c1_38 = arith.constant 1 : index
    %c0_39 = arith.constant 0 : index
    %91 = vector.load %arg6[%c1_38, %c0_39] : memref<3x128xf32, #tpu.memory_space<vmem>>, vector<1x128xf32>
    %cst_40 = arith.constant dense<0.000000e+00> : vector<16x128xf32>
    %92 = tpu.matmul %82, %90, %cst_40 {dimension_numbers = #tpu.dot_dimension_numbers<[1], [0], [0], [1], [0, 0, 1, 1], [], []>} : vector<16x128xbf16>, vector<128x128xbf16>, vector<16x128xf32> -> vector<16x128xf32>
    %93 = vector.broadcast %91 : vector<1x128xf32> to vector<16x128xf32>
    %94 = arith.addf %92, %93 : vector<16x128xf32>
    %95 = arith.truncf %94 : vector<16x128xf32> to vector<16x128xbf16>
    %96 = vector.shape_cast %95 : vector<16x128xbf16> to vector<2x8x128xbf16>
    %c0_41 = arith.constant 0 : index
    %c256_42 = arith.constant 256 : index
    %97 = vector.load %arg5[%c0_41, %c256_42] : memref<128x384xbf16, #tpu.memory_space<vmem>>, vector<128x128xbf16>
    %c2_43 = arith.constant 2 : index
    %c0_44 = arith.constant 0 : index
    %98 = vector.load %arg6[%c2_43, %c0_44] : memref<3x128xf32, #tpu.memory_space<vmem>>, vector<1x128xf32>
    %cst_45 = arith.constant dense<0.000000e+00> : vector<16x128xf32>
    %99 = tpu.matmul %82, %97, %cst_45 {dimension_numbers = #tpu.dot_dimension_numbers<[1], [0], [0], [1], [0, 0, 1, 1], [], []>} : vector<16x128xbf16>, vector<128x128xbf16>, vector<16x128xf32> -> vector<16x128xf32>
    %100 = vector.broadcast %98 : vector<1x128xf32> to vector<16x128xf32>
    %101 = arith.addf %99, %100 : vector<16x128xf32>
    %102 = arith.truncf %101 : vector<16x128xf32> to vector<16x128xbf16>
    %103 = vector.shape_cast %102 : vector<16x128xbf16> to vector<2x8x128xbf16>
    "tpu.trace_start"() <{level = 10 : i32, message = "bqh,bkh->bqk"}> : () -> ()
    %cst_46 = arith.constant dense<0.000000e+00> : vector<2x8x8xf32>
    %104 = tpu.matmul %89, %96, %cst_46 {dimension_numbers = #tpu.dot_dimension_numbers<[2], [2], [1], [1], [0, 0, 0, 1, 1, 1], [0], [0]>} : vector<2x8x128xbf16>, vector<2x8x128xbf16>, vector<2x8x8xf32> -> vector<2x8x8xf32>
    "tpu.trace_stop"() : () -> ()
    %cst_47 = arith.constant dense<0xFF800000> : vector<2x8xf32>
    %105 = vector.multi_reduction <maximumf>, %104, %cst_47 [2] : vector<2x8x8xf32> to vector<2x8xf32>
    %106 = vector.shape_cast %105 : vector<2x8xf32> to vector<2x8x1xf32>
    %107 = vector.broadcast %106 : vector<2x8x1xf32> to vector<2x8x8xf32>
    %108 = arith.subf %104, %107 : vector<2x8x8xf32>
    %109 = math.exp %108 : vector<2x8x8xf32>
    %cst_48 = arith.constant dense<0.000000e+00> : vector<2x8xf32>
    %110 = vector.multi_reduction <add>, %109, %cst_48 [2] : vector<2x8x8xf32> to vector<2x8xf32>
    %111 = vector.shape_cast %110 : vector<2x8xf32> to vector<2x8x1xf32>
    %112 = tpu.reciprocal %111 {approx = true} : vector<2x8x1xf32> -> vector<2x8x1xf32>
    %113 = vector.broadcast %112 : vector<2x8x1xf32> to vector<2x8x8xf32>
    %114 = arith.mulf %109, %113 : vector<2x8x8xf32>
    %115 = arith.truncf %114 : vector<2x8x8xf32> to vector<2x8x8xbf16>
    "tpu.trace_start"() <{level = 10 : i32, message = "bqk,bkh->bqh"}> : () -> ()
    %cst_49 = arith.constant dense<0.000000e+00> : vector<2x8x128xf32>
    %116 = tpu.matmul %115, %103, %cst_49 {dimension_numbers = #tpu.dot_dimension_numbers<[2], [1], [1], [2], [0, 0, 0, 1, 1, 2], [0], [0]>} : vector<2x8x8xbf16>, vector<2x8x128xbf16>, vector<2x8x128xf32> -> vector<2x8x128xf32>
    "tpu.trace_stop"() : () -> ()
    %117 = vector.shape_cast %116 : vector<2x8x128xf32> to vector<16x128xf32>
    %118 = arith.truncf %117 : vector<16x128xf32> to vector<16x128xbf16>
    %c0_50 = arith.constant 0 : index
    %c0_51 = arith.constant 0 : index
    %119 = vector.load %arg7[%c0_50, %c0_51] : memref<128x128xbf16, #tpu.memory_space<vmem>>, vector<128x128xbf16>
    %cst_52 = arith.constant dense<0.000000e+00> : vector<16x128xf32>
    %120 = tpu.matmul %118, %119, %cst_52 {dimension_numbers = #tpu.dot_dimension_numbers<[1], [0], [0], [1], [0, 0, 1, 1], [], []>} : vector<16x128xbf16>, vector<128x128xbf16>, vector<16x128xf32> -> vector<16x128xf32>
    %121 = arith.addf %61, %120 : vector<16x128xf32>
    %122 = arith.truncf %121 : vector<16x128xf32> to vector<16x128xbf16>
    %c0_53 = arith.constant 0 : index
    %c0_54 = arith.constant 0 : index
    %123 = vector.load %arg8[%c0_53, %c0_54] : memref<128x128xbf16, #tpu.memory_space<vmem>>, vector<128x128xbf16>
    %cst_55 = arith.constant dense<0.000000e+00> : vector<16x128xf32>
    %124 = tpu.matmul %122, %123, %cst_55 {dimension_numbers = #tpu.dot_dimension_numbers<[1], [0], [0], [1], [0, 0, 1, 1], [], []>} : vector<16x128xbf16>, vector<128x128xbf16>, vector<16x128xf32> -> vector<16x128xf32>
    %c0_56 = arith.constant 0 : index
    %c0_57 = arith.constant 0 : index
    %125 = vector.load %arg9[%c0_56, %c0_57] : memref<3x128xf32, #tpu.memory_space<vmem>>, vector<1x128xf32>
    %126 = vector.broadcast %125 : vector<1x128xf32> to vector<16x128xf32>
    %127 = arith.addf %124, %126 : vector<16x128xf32>
    %128 = arith.addf %121, %127 : vector<16x128xf32>
    %cst_58 = arith.constant dense<0.000000e+00> : vector<16xf32>
    %129 = vector.multi_reduction <add>, %128, %cst_58 [1] : vector<16x128xf32> to vector<16xf32>
    %130 = vector.shape_cast %129 : vector<16xf32> to vector<16x1xf32>
    %cst_59 = arith.constant 6.250000e-02 : f32
    %131 = vector.broadcast %cst_59 : f32 to vector<16x1xf32>
    %132 = arith.mulf %130, %131 : vector<16x1xf32>
    %133 = arith.mulf %128, %128 : vector<16x128xf32>
    %cst_60 = arith.constant dense<0.000000e+00> : vector<16xf32>
    %134 = vector.multi_reduction <add>, %133, %cst_60 [1] : vector<16x128xf32> to vector<16xf32>
    %135 = vector.shape_cast %134 : vector<16xf32> to vector<16x1xf32>
    %cst_61 = arith.constant 6.250000e-02 : f32
    %136 = vector.broadcast %cst_61 : f32 to vector<16x1xf32>
    %137 = arith.mulf %135, %136 : vector<16x1xf32>
    %138 = arith.mulf %132, %132 : vector<16x1xf32>
    %139 = arith.subf %137, %138 : vector<16x1xf32>
    %cst_62 = arith.constant 0.000000e+00 : f32
    %140 = vector.broadcast %cst_62 : f32 to vector<16x1xf32>
    %141 = arith.maximumf %139, %140 : vector<16x1xf32>
    %142 = vector.broadcast %132 : vector<16x1xf32> to vector<16x128xf32>
    %143 = arith.subf %128, %142 : vector<16x128xf32>
    %cst_63 = arith.constant 9.99999974E-6 : f32
    %144 = vector.broadcast %cst_63 : f32 to vector<16x1xf32>
    %145 = arith.addf %141, %144 : vector<16x1xf32>
    %146 = math.rsqrt %145 : vector<16x1xf32>
    %147 = vector.broadcast %146 : vector<16x1xf32> to vector<16x128xf32>
    %148 = arith.mulf %143, %147 : vector<16x128xf32>
    %c1_64 = arith.constant 1 : index
    %c0_65 = arith.constant 0 : index
    %149 = vector.load %arg9[%c1_64, %c0_65] : memref<3x128xf32, #tpu.memory_space<vmem>>, vector<1x128xf32>
    %150 = vector.broadcast %149 : vector<1x128xf32> to vector<16x128xf32>
    %151 = arith.mulf %148, %150 : vector<16x128xf32>
    %c2_66 = arith.constant 2 : index
    %c0_67 = arith.constant 0 : index
    %152 = vector.load %arg9[%c2_66, %c0_67] : memref<3x128xf32, #tpu.memory_space<vmem>>, vector<1x128xf32>
    %153 = vector.broadcast %152 : vector<1x128xf32> to vector<16x128xf32>
    %154 = arith.addf %151, %153 : vector<16x128xf32>
    %155 = vector.shape_cast %154 : vector<16x128xf32> to vector<2x8x128xf32>
    %c0_68 = arith.constant 0 : index
    %c0_69 = arith.constant 0 : index
    %c0_70 = arith.constant 0 : index
    %156 = vector.load %arg10[%c0_68, %c0_69, %c0_70] : memref<2x8x128xf32, #tpu.memory_space<vmem>>, vector<2x8x128xf32>
    tpu.vector_store %arg10[%c0_68, %c0_69, %c0_70], %155 {strides = array<i32>} : memref<2x8x128xf32, #tpu.memory_space<vmem>>, vector<2x8x128xf32>,
    return
  }
  func.func @transform_0(%arg0: i32) -> (i32, i32, i32) {
    %c0_i32 = arith.constant 0 : i32
    %c0_i32_0 = arith.constant 0 : i32
    %c0_i32_1 = arith.constant 0 : i32
    return %arg0, %c0_i32, %c0_i32_0 : i32, i32, i32
  }
  func.func @transform_1(%arg0: i32) -> (i32, i32) {
    %c0_i32 = arith.constant 0 : i32
    %c0_i32_0 = arith.constant 0 : i32
    %c0_i32_1 = arith.constant 0 : i32
    return %c0_i32, %c0_i32_0 : i32, i32
  }
  func.func @transform_2(%arg0: i32) -> (i32, i32) {
    %c0_i32 = arith.constant 0 : i32
    %c0_i32_0 = arith.constant 0 : i32
    %c0_i32_1 = arith.constant 0 : i32
    return %c0_i32, %c0_i32_0 : i32, i32
  }
  func.func @transform_3(%arg0: i32) -> (i32, i32) {
    %c0_i32 = arith.constant 0 : i32
    %c0_i32_0 = arith.constant 0 : i32
    %c0_i32_1 = arith.constant 0 : i32
    return %c0_i32, %c0_i32_0 : i32, i32
  }
  func.func @transform_4(%arg0: i32) -> (i32, i32) {
    %c0_i32 = arith.constant 0 : i32
    %c0_i32_0 = arith.constant 0 : i32
    %c0_i32_1 = arith.constant 0 : i32
    return %c0_i32, %c0_i32_0 : i32, i32
  }
  func.func @transform_5(%arg0: i32) -> (i32, i32) {
    %c0_i32 = arith.constant 0 : i32
    %c0_i32_0 = arith.constant 0 : i32
    %c0_i32_1 = arith.constant 0 : i32
    return %c0_i32, %c0_i32_0 : i32, i32
  }
  func.func @transform_6(%arg0: i32) -> (i32, i32) {
    %c0_i32 = arith.constant 0 : i32
    %c0_i32_0 = arith.constant 0 : i32
    %c0_i32_1 = arith.constant 0 : i32
    return %c0_i32, %c0_i32_0 : i32, i32
  }
  func.func @transform_7(%arg0: i32) -> (i32, i32) {
    %c0_i32 = arith.constant 0 : i32
    %c0_i32_0 = arith.constant 0 : i32
    %c0_i32_1 = arith.constant 0 : i32
    return %c0_i32, %c0_i32_0 : i32, i32
  }
  func.func @transform_8(%arg0: i32) -> (i32, i32) {
    %c0_i32 = arith.constant 0 : i32
    %c0_i32_0 = arith.constant 0 : i32
    %c0_i32_1 = arith.constant 0 : i32
    return %c0_i32, %c0_i32_0 : i32, i32
  }
  func.func @transform_9(%arg0: i32) -> (i32, i32, i32) {
    %c0_i32 = arith.constant 0 : i32
    %c0_i32_0 = arith.constant 0 : i32
    %c0_i32_1 = arith.constant 0 : i32
    return %arg0, %c0_i32, %c0_i32_0 : i32, i32, i32
  }
}

</mosaic_0001>

<bundles_post_ra>
// kernel: tpu_custom_call.1
= control target key start
LH: loop header
LB: loop body
LE: loop exit
PB: predicated region body
PF: predicated region fallthrough
CT: control target
= control target key end

     0   :  { %14 = vsyncpa [#allocation3], 0  ;;  %s2736_s0 = inlined_call_operand.hbm [shape: f32[2,8,128], index: 0, kind: input, shape index: {}]   ;;  %s2737_s1 = inlined_call_operand.hbm [shape: bf16[128,384], index: 1, kind: input, shape index: {}]   ;;  %s2738_s2 = inlined_call_operand.vmem [shape: f32[3,128], index: 2, kind: input, shape index: {}]   ;;  %s2739_s3 = inlined_call_operand.hbm [shape: bf16[128,128], index: 3, kind: input, shape index: {}]   ;;  %s2740_s4 = inlined_call_operand.hbm [shape: bf16[128,384], index: 4, kind: input, shape index: {}]   ;;  %s2741_s5 = inlined_call_operand.vmem [shape: f32[3,128], index: 5, kind: input, shape index: {}]   ;;  %s2742_s6 = inlined_call_operand.hbm [shape: bf16[128,128], index: 6, kind: input, shape index: {}]   ;;  %s2743_s7 = inlined_call_operand.hbm [shape: bf16[128,128], index: 7, kind: input, shape index: {}]   ;;  %s2744_s8 = inlined_call_operand.vmem [shape: f32[3,128], index: 8, kind: input, shape index: {}]   ;;  %s2745_s9 = inlined_call_operand.hbm [shape: f32[2,8,128], index: 9, kind: output, shape index: {}]  }
   0x1   :  { %15 = vsyncpa [#allocation6], 0 }
   0x2   :  { %16 = vsyncpa [#allocation9], 0 }
   0x3   :  { %17 = vsyncpa [#allocation12], 0 }
   0x4   :  { %18 = vsyncpa [#allocation4], 0  ;;  %s2380_s30 = smov [#allocation5]   ;;  %s2216_s13 = scalar_lea.hbm %s2737_s1, 3072 }
   0x5   :  { %s36_s10 = sshll.u32 %s2380_s30, 4  ;;  %p2217_p0 = scmp.ne.s32.totalorder %s2737_s1, %s2216_s13  ;;  %s37_s10 = int_to_ptr.vmem [resolvable:$true] %s36_s10 }
   0x6   :  { %p2220_p1 = scmp.lt.u32.totalorder %s2216_s13, %s2737_s1 }
   0x8   :  { %p2222_p2 = pnand %p2220_p1, %p2217_p0 }
   0xa   :  { %2225 = shalt.err (!%p2222_p2)
}
   0xb   :  { %s2226_s18 = scalar_lea.vmem %s37_s10, 3072  ;;  %p2231_p4 = scmp.lt.s32.totalorder %s37_s10, %s37_s10 }
   0xc   :  { %p2227_p3 = scmp.ne.s32.totalorder %s37_s10, %s2226_s18  ;;  %p2232_p5 = scmp.lt.s32.totalorder %s2226_s18, %s2226_s18 }
   0xe   :  { %p2233_p6 = por %p2232_p5, %p2231_p4 }
  0x10   :  { %p2234_p7 = pnand %p2233_p6, %p2227_p3 }
  0x12   :  { %2237 = shalt.err (!%p2234_p7)
}
  0x13   :  { %s2381_s19 = smov 192   ;;  %s2382_s20 = smov 12  }
  0x14   :  { %42 = dma.hbm_to_vmem [thread:$0]  %s2737_s1, 3072, %s37_s10, [#allocation6], %s2381_s19, %s2381_s19, %s2382_s20  }
  0x15   :  { %s2383_s23 = smov [#allocation8]   ;;  %s2384_s25 = smov [#allocation2]  }
  0x16   :  { %s62_s24 = sshll.u32 %s2383_s23, 4  ;;  %s24_s26 = sshll.u32 %s2384_s25, 4  ;;  %s63_s24 = int_to_ptr.vmem [resolvable:$true] %s62_s24  ;;  %s25_s26 = int_to_ptr.vmem [resolvable:$true] %s24_s26 }
  0x17   :  { %s2238_s29 = scalar_lea.hbm %s2740_s4, 3072 }
  0x18   :  { %p2239_p8 = scmp.ne.s32.totalorder %s2740_s4, %s2238_s29  ;;  %p2242_p9 = scmp.lt.u32.totalorder %s2238_s29, %s2740_s4 }
  0x1a   :  { %p2244_p10 = pnand %p2242_p9, %p2239_p8 }
  0x1c   :  { %2247 = shalt.err (!%p2244_p10)
}
  0x1d   :  { %s2248_s1 = scalar_lea.vmem %s63_s24, 3072  ;;  %p2253_p12 = scmp.lt.s32.totalorder %s63_s24, %s63_s24 }
  0x1e   :  { %p2249_p11 = scmp.ne.s32.totalorder %s63_s24, %s2248_s1  ;;  %p2254_p13 = scmp.lt.s32.totalorder %s2248_s1, %s2248_s1 }
  0x20   :  { %p2255_p0 = por %p2254_p13, %p2253_p12 }
  0x22   :  { %p2256_p1 = pnand %p2255_p0, %p2249_p11 }
  0x24   :  { %2259 = shalt.err (!%p2256_p1)
}
  0x25   :  { %68 = dma.hbm_to_vmem [thread:$0]  %s2740_s4, 3072, %s63_s24, [#allocation9], %s2381_s19, %s2381_s19, %s2382_s20  }
  0x26   :  { %s2260_s17 = scalar_lea.hbm %s2736_s0, 256 }
  0x27   :  { %p2261_p2 = scmp.ne.s32.totalorder %s2736_s0, %s2260_s17  ;;  %p2264_p3 = scmp.lt.u32.totalorder %s2260_s17, %s2736_s0 }
  0x29   :  { %p2266_p4 = pnand %p2264_p3, %p2261_p2 }
  0x2b   :  { %2269 = shalt.err (!%p2266_p4)
}
  0x2c   :  { %s2270_s25 = scalar_lea.vmem %s25_s26, 256  ;;  %p2275_p6 = scmp.lt.s32.totalorder %s25_s26, %s25_s26 }
  0x2d   :  { %p2271_p5 = scmp.ne.s32.totalorder %s25_s26, %s2270_s25  ;;  %p2276_p7 = scmp.lt.s32.totalorder %s2270_s25, %s2270_s25 }
  0x2f   :  { %p2277_p8 = por %p2276_p7, %p2275_p6 }
  0x31   :  { %p2278_p9 = pnand %p2277_p8, %p2271_p5 }
  0x33   :  { %2281 = shalt.err (!%p2278_p9)
}
  0x34   :  { %s2385_s4 = smov 128   ;;  %s2386_s19 = smov 8  }
  0x35   :  { %30 = dma.hbm_to_vmem [thread:$0]  %s2736_s0, 256, %s25_s26, [#allocation3], %s2385_s4, %s2385_s4, %s2386_s19  }
  0x36   :  { %s2387_s27 = smov [#allocation7]   ;;  %s2282_s11 = scalar_lea.hbm %s2739_s3, 1024 }
  0x37   :  { %s50_s28 = sshll.u32 %s2387_s27, 4  ;;  %p2283_p10 = scmp.ne.s32.totalorder %s2739_s3, %s2282_s11  ;;  %s51_s28 = int_to_ptr.vmem [resolvable:$true] %s50_s28 }
  0x38   :  { %p2286_p11 = scmp.lt.u32.totalorder %s2282_s11, %s2739_s3 }
  0x3a   :  { %p2288_p12 = pnand %p2286_p11, %p2283_p10 }
  0x3c   :  { %2291 = shalt.err (!%p2288_p12)
}
  0x3d   :  { %s2292_s14 = scalar_lea.vmem %s51_s28, 1024  ;;  %p2297_p0 = scmp.lt.s32.totalorder %s51_s28, %s51_s28 }
  0x3e   :  { %p2293_p13 = scmp.ne.s32.totalorder %s51_s28, %s2292_s14  ;;  %p2298_p1 = scmp.lt.s32.totalorder %s2292_s14, %s2292_s14 }
  0x40   :  { %p2299_p2 = por %p2298_p1, %p2297_p0 }
  0x42   :  { %p2300_p3 = pnand %p2299_p2, %p2293_p13 }
  0x44   :  { %2303 = shalt.err (!%p2300_p3)
}
  0x45   :  { %s2388_s0 = smov 64   ;;  %s2389_s26 = smov 4  }
  0x46   :  { %56 = dma.hbm_to_vmem [thread:$0]  %s2739_s3, 1024, %s51_s28, [#allocation6], %s2388_s0, %s2388_s0, %s2389_s26  }
  0x47   :  { %s2390_s17 = smov [#allocation10]   ;;  %s2391_s21 = smov [#allocation11]  }
  0x48   :  { %s76_s18 = sshll.u32 %s2390_s17, 4  ;;  %s88_s22 = sshll.u32 %s2391_s21, 4  ;;  %s77_s18 = int_to_ptr.vmem [resolvable:$true] %s76_s18  ;;  %s2499_s22 = int_to_ptr.vmem [resolvable:$true] %s88_s22 }
  0x49   :  { %s2304_s20 = scalar_lea.hbm %s2742_s6, 1024 }
  0x4a   :  { %p2305_p4 = scmp.ne.s32.totalorder %s2742_s6, %s2304_s20  ;;  %p2308_p5 = scmp.lt.u32.totalorder %s2304_s20, %s2742_s6 }
  0x4c   :  { %p2310_p6 = pnand %p2308_p5, %p2305_p4 }
  0x4e   :  { %2313 = shalt.err (!%p2310_p6)
}
  0x4f   :  { %s2314_s3 = scalar_lea.vmem %s77_s18, 1024  ;;  %p2319_p8 = scmp.lt.s32.totalorder %s77_s18, %s77_s18 }
  0x50   :  { %p2315_p7 = scmp.ne.s32.totalorder %s77_s18, %s2314_s3  ;;  %p2320_p9 = scmp.lt.s32.totalorder %s2314_s3, %s2314_s3 }
  0x52   :  { %p2321_p10 = por %p2320_p9, %p2319_p8 }
  0x54   :  { %p2322_p11 = pnand %p2321_p10, %p2315_p7 }
  0x56   :  { %2325 = shalt.err (!%p2322_p11)
}
  0x57   :  { %82 = dma.hbm_to_vmem [thread:$0]  %s2742_s6, 1024, %s77_s18, [#allocation9], %s2388_s0, %s2388_s0, %s2389_s26  }
  0x58   :  { %s2326_s1 = scalar_lea.hbm %s2743_s7, 1024 }
  0x59   :  { %p2327_p12 = scmp.ne.s32.totalorder %s2743_s7, %s2326_s1  ;;  %p2330_p13 = scmp.lt.u32.totalorder %s2326_s1, %s2743_s7 }
  0x5b   :  { %p2332_p0 = pnand %p2330_p13, %p2327_p12 }
  0x5d   :  { %2335 = shalt.err (!%p2332_p0)
}
  0x5e   :  { %s2336_s17 = scalar_lea.vmem %s2499_s22, 1024  ;;  %p2341_p2 = scmp.lt.s32.totalorder %s2499_s22, %s2499_s22 }
  0x5f   :  { %p2337_p1 = scmp.ne.s32.totalorder %s2499_s22, %s2336_s17  ;;  %p2342_p3 = scmp.lt.s32.totalorder %s2336_s17, %s2336_s17 }
  0x61   :  { %p2343_p4 = por %p2342_p3, %p2341_p2 }
  0x63   :  { %p2344_p5 = pnand %p2343_p4, %p2337_p1 }
  0x65   :  { %2347 = shalt.err (!%p2344_p5)
}
  0x66   :  { %94 = dma.hbm_to_vmem [thread:$0]  %s2743_s7, 1024, %s2499_s22, [#allocation12], %s2388_s0, %s2388_s0, %s2389_s26  }
  0x67   :  { %2370 = dma.done.wait [#allocation3], 256  }
  0x68   :  { %2371 = vsyncadd [#allocation3], 4294967040 }
  0x69   :  { %2372 = dma.done.wait [#allocation6], 4096  }
  0x6a   :  { %2373 = vsyncadd [#allocation6], 4294963200 }
  0x6b   :  { %2374 = dma.done.wait [#allocation9], 4096  }
  0x6c   :  { %2375 = vsyncadd [#allocation9], 4294963200 }
  0x6d   :  { %2376 = dma.done.wait [#allocation12], 1024  }
  0x6e   :  { %2377 = vsyncadd [#allocation12], 4294966272  ;;  %v2392_v0 = vmov 0.0   ;;  %v2538_v1 = vld [vmem:[#allocation2] sm:$0xff]  ;;  %v2540_v2 = vld [vmem:[#allocation2 + $0x8] sm:$0xff]  ;;  %vm2393_vm0 = vmmov 0  }
  0x6f   :  { %1873 = vmatprep.subr.bf16.mxu0 %v2392_v0  ;;  %1893 = vmatprep.subr.bf16.mxu1 %v2392_v0  ;;  %v124_v3 = vmul.f32 %v2538_v1, %v2538_v1  ;;  %v2116_v4 = vld [vmem:[#allocation5] ss:$12 sps:$4 sm:$0xff]   ;;  %v2117_v5 = vld [vmem:[#allocation5 + $0x4] ss:$12 sps:$4 sm:$0xff]   ;;  %v125_v6 = vmul.f32 %v2540_v2, %v2540_v2  ;;  %v2119_v8 = vld [vmem:[#allocation5 + $0x1c] ss:$12 sps:$4 sm:$0xff]  }
  0x70   :  { %118 = vadd.xlane.f32.xlu0 %v2538_v1  ;;  %1874 = vmatpush3.bf16.msra.mxu0 %v2116_v4  ;;  %v2118_v7 = vld [vmem:[#allocation5 + $0x18] ss:$12 sps:$4 sm:$0xff]   ;;  %v2120_v9 = vld [vmem:[#allocation5 + $0x30] ss:$12 sps:$4 sm:$0xff]   ;;  %v2121_v10 = vld [vmem:[#allocation5 + $0x34] ss:$12 sps:$4 sm:$0xff]  }
  0x71   :  { %126 = vadd.xlane.f32.xlu1 %v124_v3  ;;  %1894 = vmatpush3.bf16.msra.mxu1 %v2117_v5  ;;  %v2122_v11 = vld [vmem:[#allocation5 + $0x48] ss:$12 sps:$4 sm:$0xff]   ;;  %v2123_v12 = vld [vmem:[#allocation5 + $0x4c] ss:$12 sps:$4 sm:$0xff]   ;;  %v2125_v14 = vld [vmem:[#allocation5 + $0x64] ss:$12 sps:$4 sm:$0xff]  }
  0x72   :  { %1875 = vmatprep.subr.bf16.mxu0 %v2392_v0  ;;  %1895 = vmatprep.subr.bf16.mxu1 %v2392_v0  ;;  %v2124_v13 = vld [vmem:[#allocation5 + $0x60] ss:$12 sps:$4 sm:$0xff]   ;;  %v2126_v15 = vld [vmem:[#allocation5 + $0x78] ss:$12 sps:$4 sm:$0xff]   ;;  %v2127_v16 = vld [vmem:[#allocation5 + $0x7c] ss:$12 sps:$4 sm:$0xff]  }
  0x73   :  { %v2128_v17 = vld [vmem:[#allocation5 + $0x90] ss:$12 sps:$4 sm:$0xff]   ;;  %v2129_v18 = vld [vmem:[#allocation5 + $0x94] ss:$12 sps:$4 sm:$0xff]   ;;  %1889 = vmatprep.mubr.msk.bf16.mxu0 %vm2393_vm0, %v2392_v0  ;;  %1909 = vmatprep.mubr.msk.bf16.mxu1 %vm2393_vm0, %v2392_v0  ;;  %v2131_v20 = vld [vmem:[#allocation5 + $0xac] ss:$12 sps:$4 sm:$0xff]  }
  0x74   :  { %120 = vadd.xlane.f32.xlu0 %v2540_v2  ;;  %1876 = vmatpush3.bf16.msra.mxu0 %v2118_v7  ;;  %v2130_v19 = vld [vmem:[#allocation5 + $0xa8] ss:$12 sps:$4 sm:$0xff]   ;;  %v2133_v45 = vld [vmem:[#allocation5 + $0x20] ss:$12 sps:$4 sm:$0xff]   ;;  %v2134_v46 = vld [vmem:[#allocation5 + $0x38] ss:$12 sps:$4 sm:$0xff]  }
  0x75   :  { %128 = vadd.xlane.f32.xlu1 %v125_v6  ;;  %1896 = vmatpush3.bf16.msra.mxu1 %v2119_v8  ;;  %v2132_v43 = vld [vmem:[#allocation5 + $0x8] ss:$12 sps:$4 sm:$0xff]   ;;  %v2135_v47 = vld [vmem:[#allocation5 + $0x50] ss:$12 sps:$4 sm:$0xff]   ;;  %v2137_v49 = vld [vmem:[#allocation5 + $0x80] ss:$12 sps:$4 sm:$0xff]  }
  0x76   :  { %1877 = vmatprep.subr.bf16.mxu0 %v2392_v0  ;;  %1897 = vmatprep.subr.bf16.mxu1 %v2392_v0  ;;  %v2136_v48 = vld [vmem:[#allocation5 + $0x68] ss:$12 sps:$4 sm:$0xff]   ;;  %v2138_v50 = vld [vmem:[#allocation5 + $0x98] ss:$12 sps:$4 sm:$0xff]   ;;  %v2139_v51 = vld [vmem:[#allocation5 + $0xb0] ss:$12 sps:$4 sm:$0xff]  }
  0x77   :  { %v1678_v52 = vld [vmem:[%s2738_s2 + $0x1] ss:$0 sm:$0xff]  ;;  %v1667_v60 = vld [vmem:[%s2738_s2] ss:$0 sm:$0xff]  ;;  %vm607_vm1 = vcmask 1043456   ;;  %vm579_vm2 = vcmask 64512  }
  0x78   :  { %1878 = vmatpush3.bf16.msra.mxu0 %v2120_v9  ;;  %v1689_v9 = vld [vmem:[%s2738_s2 + $0x2] ss:$0 sm:$0xff]  ;;  %s2394_s13 = smov [#allocation13]  }
  0x79   :  { %1898 = vmatpush3.bf16.msra.mxu1 %v2121_v10  ;;  %1879 = vmatprep.subr.bf16.mxu0 %v2392_v0  ;;  %s1652_s1 = sshll.u32 %s2394_s13, 4  ;;  %s1653_s1 = int_to_ptr.vmem [resolvable:$true] %s1652_s1 }
  0x7a   :  { %1899 = vmatprep.subr.bf16.mxu1 %v2392_v0  ;;  %s2348_s10 = scalar_lea.vmem %s1653_s1, 256  ;;  %p2353_p7 = scmp.lt.s32.totalorder %s1653_s1, %s1653_s1 }
  0x7b   :  { %p2349_p6 = scmp.ne.s32.totalorder %s1653_s1, %s2348_s10  ;;  %p2354_p8 = scmp.lt.s32.totalorder %s2348_s10, %s2348_s10 }
  0x7c   :  { %1880 = vmatpush3.bf16.msra.mxu0 %v2122_v11 }
  0x7d   :  { %1900 = vmatpush3.bf16.msra.mxu1 %v2123_v12  ;;  %1881 = vmatprep.subr.bf16.mxu0 %v2392_v0  ;;  %p2355_p9 = por %p2354_p8, %p2353_p7 }
  0x7e   :  { %1901 = vmatprep.subr.bf16.mxu1 %v2392_v0 }
  0x7f   :  { %p2356_p10 = pnand %p2355_p9, %p2349_p6 }
  0x80   :  { %1882 = vmatpush3.bf16.msra.mxu0 %v2124_v13 }
  0x81   :  { %1902 = vmatpush3.bf16.msra.mxu1 %v2125_v14  ;;  %1883 = vmatprep.subr.bf16.mxu0 %v2392_v0 }
  0x82   :  { %1903 = vmatprep.subr.bf16.mxu1 %v2392_v0 }
  0x84   :  { %1884 = vmatpush3.bf16.msra.mxu0 %v2126_v15 }
  0x85   :  { %1904 = vmatpush3.bf16.msra.mxu1 %v2127_v16  ;;  %1885 = vmatprep.subr.bf16.mxu0 %v2392_v0 }
  0x86   :  { %1905 = vmatprep.subr.bf16.mxu1 %v2392_v0 }
  0x88   :  { %1886 = vmatpush3.bf16.msra.mxu0 %v2128_v17 }
  0x89   :  { %1906 = vmatpush3.bf16.msra.mxu1 %v2129_v18  ;;  %1887 = vmatprep.subr.bf16.mxu0 %v2392_v0 }
  0x8a   :  { %1907 = vmatprep.subr.bf16.mxu1 %v2392_v0 }
  0x8c   :  { %1888 = vmatpush3.bf16.msra.mxu0 %v2130_v19 }
  0x8d   :  { %1908 = vmatpush3.bf16.msra.mxu1 %v2131_v20  ;;  %1913 = vmatprep.subr.bf16.mxu0 %v2392_v0 }
  0x8e   :  { %1933 = vmatprep.subr.bf16.mxu1 %v2392_v0 }
  0xfd   :  { %v119_v21 = vpop.xlane.xlu0 %118 }
  0xfe   :  { %v122_v22 = vmul.f32 0.0625, %v119_v21  ;;  %v127_v23 = vpop.xlane.xlu1 %126 }
  0xff   :  { %v130_v25 = vmul.f32 0.0625, %v127_v23 }
 0x100   :  { %v132_v24 = vmul.f32 %v122_v22, %v122_v22  ;;  %v138_v38 = vsub.f32 %v2538_v1, %v122_v22 }
 0x101   :  { %v121_v26 = vpop.xlane.xlu0 %120 }
 0x102   :  { %v134_v27 = vsub.f32 %v130_v25, %v132_v24  ;;  %v123_v28 = vmul.f32 0.0625, %v121_v26  ;;  %v129_v29 = vpop.xlane.xlu1 %128 }
 0x103   :  { %v131_v32 = vmul.f32 0.0625, %v129_v29 }
 0x104   :  { %v136_v30 = vmax.f32 %v134_v27, 0.0  ;;  %v133_v31 = vmul.f32 %v123_v28, %v123_v28  ;;  %v139_v39 = vsub.f32 %v2540_v2, %v123_v28 }
 0x106   :  { %v140_v33 = vadd.f32 1e-05, %v136_v30  ;;  %v135_v34 = vsub.f32 %v131_v32, %v133_v31 }
 0x108   :  { %v137_v35 = vmax.f32 %v135_v34, 0.0  ;;  %2188 = vrsqrt.f32 %v140_v33 }
 0x10a   :  { %v141_v36 = vadd.f32 1e-05, %v137_v35 }
 0x10c   :  { %2190 = vrsqrt.f32 %v141_v36 }
 0x112   :  { %v2189_v37 = vpop.eup %2188 }
 0x113   :  { %v144_v41 = vmul.f32 %v2189_v37, %v138_v38  ;;  %v2140_v38 = vld [vmem:[#allocation7] sm:$0xff]  }
 0x116   :  { %v2191_v40 = vpop.eup %2190 }
 0x117   :  { %v145_v42 = vmul.f32 %v2191_v40, %v139_v39  ;;  %v2141_v39 = vld [vmem:[#allocation7 + $0x8] sm:$0xff]   ;;  %v2142_v40 = vld [vmem:[#allocation7 + $0x10] sm:$0xff]  }
 0x119   :  { %v146_v44 = vpack.c.bf16 %v145_v42, %v144_v41  ;;  %v2143_v41 = vld [vmem:[#allocation7 + $0x18] sm:$0xff]   ;;  %v2144_v42 = vld [vmem:[#allocation7 + $0x20] sm:$0xff]  }
 0x11b   :  { %1890 = vmatmul.mubr.bf16.vlgmr.msra.gmra.mrb[0].mxu0 %v146_v44  ;;  %1910 = vmatmul.mubr.bf16.vlgmr.msra.gmra.mrb[0].mxu1 %v146_v44 }
 0x11c   :  { %1914 = vmatpush3.bf16.msra.mxu0 %v2132_v43  ;;  %1929 = vmatprep.mubr.msk.bf16.mxu0 %vm2393_vm0, %v2392_v0 }
 0x11d   :  { %1915 = vmatprep.subr.bf16.mxu0 %v2392_v0  ;;  %1935 = vmatprep.mubr.msk.bf16.mxu1 %vm2393_vm0, %v2392_v0 }
 0x120   :  { %1916 = vmatpush3.bf16.msra.mxu0 %v2133_v45 }
 0x121   :  { %1917 = vmatprep.subr.bf16.mxu0 %v2392_v0 }
 0x124   :  { %1918 = vmatpush3.bf16.msra.mxu0 %v2134_v46 }
 0x125   :  { %1919 = vmatprep.subr.bf16.mxu0 %v2392_v0 }
 0x128   :  { %1920 = vmatpush3.bf16.msra.mxu0 %v2135_v47 }
 0x129   :  { %1921 = vmatprep.subr.bf16.mxu0 %v2392_v0 }
 0x12c   :  { %1922 = vmatpush3.bf16.msra.mxu0 %v2136_v48 }
 0x12d   :  { %1923 = vmatprep.subr.bf16.mxu0 %v2392_v0 }
 0x130   :  { %1924 = vmatpush3.bf16.msra.mxu0 %v2137_v49 }
 0x131   :  { %1925 = vmatprep.subr.bf16.mxu0 %v2392_v0 }
 0x134   :  { %1926 = vmatpush3.bf16.msra.mxu0 %v2138_v50 }
 0x135   :  { %1927 = vmatprep.subr.bf16.mxu0 %v2392_v0 }
 0x138   :  { %1928 = vmatpush3.bf16.msra.mxu0 %v2139_v51 }
 0x139   :  { %1957 = vmatprep.subr.bf16.mxu0 %v2392_v0 }
 0x13b   :  { %1930 = vmatmul.mubr.bf16.vlgmr.msra.gmra.mrb[4].mxu0 %v146_v44 }
 0x13c   :  { %1973 = vmatprep.mubr.msk.bf16.mxu0 %vm2393_vm0, %v2392_v0  ;;  %1958 = vmatpush3.bf16.msra.mxu0 %v2140_v38 }
 0x13d   :  { %1959 = vmatprep.subr.bf16.mxu0 %v2392_v0 }
 0x140   :  { %1960 = vmatpush3.bf16.msra.mxu0 %v2141_v39 }
 0x141   :  { %1961 = vmatprep.subr.bf16.mxu0 %v2392_v0 }
 0x144   :  { %1962 = vmatpush3.bf16.msra.mxu0 %v2142_v40 }
 0x145   :  { %1963 = vmatprep.subr.bf16.mxu0 %v2392_v0 }
 0x148   :  { %1964 = vmatpush3.bf16.msra.mxu0 %v2143_v41 }
 0x149   :  { %1965 = vmatprep.subr.bf16.mxu0 %v2392_v0 }
 0x14c   :  { %1966 = vmatpush3.bf16.msra.mxu0 %v2144_v42 }
 0x14d   :  { %1967 = vmatprep.subr.bf16.mxu0 %v2392_v0 }
 0x1ee   :  { %v250_v53 = vpop.f32.mrb[0].mxu0  ;;  %v368_v54 = vpop.f32.mrb[0].mxu1 }
 0x1ef   :  { %v369_v55 = vadd.f32 %v1678_v52, %v368_v54  ;;  %v1891_v56 = vpop.f32.mrb[1].mxu0  ;;  %v1911_v57 = vpop.f32.mrb[1].mxu1  ;;  %v251_v3 = vadd.f32 %v1667_v60, %v250_v53  ;;  %v2145_v53 = vld [vmem:[#allocation7 + $0x28] sm:$0xff]   ;;  %v2146_v54 = vld [vmem:[#allocation7 + $0x30] sm:$0xff]  }
 0x1f0   :  { %v253_v58 = vpop.f32.mrb[2].mxu0  ;;  %v371_v59 = vpop.f32.mrb[2].mxu1  ;;  %1968 = vmatpush3.bf16.msra.mxu0 %v2145_v53  ;;  %v2168_v53 = vld [vmem:[#allocation8 + $0x68] ss:$12 sps:$4 sm:$0xff]  }
 0x1f1   :  { %v1766_v61 = vpack.c.bf16 %v369_v55, %v369_v55  ;;  %v1892_v62 = vpop.f32.mrb[3].mxu0  ;;  %v1912_v63 = vpop.f32.mrb[3].mxu1  ;;  %v372_v4 = vadd.f32 %v1678_v52, %v371_v59  ;;  %v1764_v5 = vpack.c.bf16 %v251_v3, %v251_v3  ;;  %v254_v7 = vadd.f32 %v1667_v60, %v253_v58  ;;  %1969 = vmatprep.subr.bf16.mxu0 %v2392_v0  ;;  %v2147_v55 = vld [vmem:[#allocation7 + $0x38] sm:$0xff]  }
 0x1f3   :  { %1934 = vmatpush3.bf16.xpose.msra.mxu1 %v1766_v61  ;;  %v1767_v6 = vpack.c.bf16 %v372_v4, %v372_v4  ;;  %v1765_v8 = vpack.c.bf16 %v254_v7, %v254_v7  ;;  %v2148_v4 = vld [vmem:[#allocation8] ss:$12 sps:$4 sm:$0xff]  }
 0x1f4   :  { %1939 = vmatprep.subr.bf16.mxu1 %v2392_v0  ;;  %1970 = vmatpush3.bf16.msra.mxu0 %v2146_v54  ;;  %v2169_v54 = vld [vmem:[#allocation8 + $0x80] ss:$12 sps:$4 sm:$0xff]  }
 0x1f5   :  { %1971 = vmatprep.subr.bf16.mxu0 %v2392_v0 }
 0x1f8   :  { %1972 = vmatpush3.bf16.msra.mxu0 %v2147_v55  ;;  %v2170_v55 = vld [vmem:[#allocation8 + $0x98] ss:$12 sps:$4 sm:$0xff]  }
 0x1f9   :  { %1997 = vmatprep.subr.bf16.mxu0 %v2392_v0 }
 0x1fa   :  { %1936 = vmatmul.mubr.bf16.vlgmr.msra.gmra.mrb[4].mxu1 %v1764_v5  ;;  %v2149_v5 = vld [vmem:[#allocation8 + $0x4] ss:$12 sps:$4 sm:$0xff]  }
 0x1fb   :  { %1940 = vmatpush3.bf16.xpose.msra.mxu1 %v1767_v6  ;;  %1941 = vmatprep.mubr.msk.bf16.mxu1 %vm2393_vm0, %v2392_v0 }
 0x1fc   :  { %1945 = vmatprep.subr.bf16.mxu1 %v2392_v0 }
 0x202   :  { %1942 = vmatmul.mubr.bf16.vlgmr.msra.gmra.mrb[8].mxu1 %v1765_v8 }
 0x203   :  { %1947 = vmatprep.mubr.msk.bf16.mxu1 %vm2393_vm0, %v2392_v0 }
 0x20e   :  { %v486_v10 = vpop.f32.mrb[4].mxu0 }
 0x20f   :  { %v487_v11 = vadd.f32 %v1689_v9, %v486_v10  ;;  %v1931_v12 = vpop.f32.mrb[5].mxu0 }
 0x210   :  { %v489_v13 = vpop.f32.mrb[6].mxu0 }
 0x211   :  { %v1768_v14 = vpack.c.bf16 %v487_v11, %v487_v11  ;;  %v490_v15 = vadd.f32 %v1689_v9, %v489_v13  ;;  %v1932_v16 = vpop.f32.mrb[7].mxu0 }
 0x212   :  { %v2154_v16 = vld [vmem:[#allocation8 + $0x48] ss:$12 sps:$4 sm:$0xff]  }
 0x213   :  { %v609_v17 = vsel %vm607_vm1, %v1768_v14, 0  ;;  %v1769_v46 = vpack.c.bf16 %v490_v15, %v490_v15  ;;  %v2151_v14 = vld [vmem:[#allocation8 + $0x1c] ss:$12 sps:$4 sm:$0xff]   ;;  %v2153_v15 = vld [vmem:[#allocation8 + $0x34] ss:$12 sps:$4 sm:$0xff]  }
 0x214   :  { %1946 = vmatpush3.bf16.msra.mxu1 %v609_v17  ;;  %v2155_v17 = vld [vmem:[#allocation8 + $0x4c] ss:$12 sps:$4 sm:$0xff]  }
 0x215   :  { %1951 = vmatprep.subr.bf16.mxu1 %v2392_v0  ;;  %v655_v49 = vsel %vm607_vm1, %v1769_v46, 0 }
 0x2cd   :  { %v533_v18 = vpop.f32.mrb[4].mxu1 }
 0x2ce   :  { %v1937_v19 = vpop.f32.mrb[5].mxu1  ;;  %v580_v20 = vsel %vm579_vm2, %v533_v18, -inf }
 0x2cf   :  { %581 = vmax.xlane.f32.xlu0 %v580_v20  ;;  %v536_v21 = vpop.f32.mrb[6].mxu1  ;;  %v2157_v19 = vld [vmem:[#allocation8 + $0x64] ss:$12 sps:$4 sm:$0xff]  }
 0x2d0   :  { %v1938_v22 = vpop.f32.mrb[7].mxu1  ;;  %v2158_v20 = vld [vmem:[#allocation8 + $0x78] ss:$12 sps:$4 sm:$0xff]   ;;  %v2159_v21 = vld [vmem:[#allocation8 + $0x7c] ss:$12 sps:$4 sm:$0xff]  }
 0x2d1   :  { %v2160_v22 = vld [vmem:[#allocation8 + $0x90] ss:$12 sps:$4 sm:$0xff]  }
 0x2d5   :  { %v573_v23 = vpop.f32.mrb[8].mxu1 }
 0x2d6   :  { %v1943_v24 = vpop.f32.mrb[9].mxu1  ;;  %v583_v25 = vsel %vm579_vm2, %v573_v23, -inf }
 0x2d7   :  { %584 = vmax.xlane.f32.xlu1 %v583_v25  ;;  %v576_v26 = vpop.f32.mrb[10].mxu1  ;;  %v2162_v24 = vld [vmem:[#allocation8 + $0xa8] ss:$12 sps:$4 sm:$0xff]   ;;  %v2163_v25 = vld [vmem:[#allocation8 + $0xac] ss:$12 sps:$4 sm:$0xff]  }
 0x2d8   :  { %v1944_v27 = vpop.f32.mrb[11].mxu1 }
 0x35c   :  { %v582_v28 = vpop.xlane.xlu0 %581 }
 0x35d   :  { %v586_v29 = vsub.f32 %v533_v18, %v582_v28  ;;  %v2156_v18 = vld [vmem:[#allocation8 + $0x60] ss:$12 sps:$4 sm:$0xff]  }
 0x35f   :  { %v588_v30 = vmul.f32 1.442695, %v586_v29 }
 0x361   :  { %2192 = vpow2.f32 %v588_v30 }
 0x364   :  { %v585_v31 = vpop.xlane.xlu1 %584 }
 0x365   :  { %v587_v32 = vsub.f32 %v573_v23, %v585_v31  ;;  %v2161_v23 = vld [vmem:[#allocation8 + $0x94] ss:$12 sps:$4 sm:$0xff]  }
 0x367   :  { %v590_v33 = vmul.f32 1.442695, %v587_v32 }
 0x369   :  { %2194 = vpow2.f32 %v590_v33 }
 0x36b   :  { %v2193_v34 = vpop.eup %2192 }
 0x36c   :  { %v592_v35 = vsel %vm579_vm2, %v2193_v34, 0.0 }
 0x36d   :  { %593 = vadd.xlane.f32.xlu0 %v592_v35 }
 0x373   :  { %v2195_v36 = vpop.eup %2194 }
 0x374   :  { %v595_v37 = vsel %vm579_vm2, %v2195_v36, 0.0 }
 0x375   :  { %596 = vadd.xlane.f32.xlu1 %v595_v37 }
 0x3fa   :  { %v594_v43 = vpop.xlane.xlu0 %593 }
 0x3fb   :  { %2196 = vrcp.f32 %v594_v43 }
 0x402   :  { %v597_v44 = vpop.xlane.xlu1 %596 }
 0x403   :  { %2198 = vrcp.f32 %v597_v44 }
 0x405   :  { %v2197_v45 = vpop.eup %2196 }
 0x406   :  { %v600_v47 = vmul.f32 %v2197_v45, %v2193_v34 }
 0x408   :  { %v602_v48 = vpack.c.bf16 %v600_v47, %v600_v47 }
 0x40a   :  { %1948 = vmatmul.mubr.msk.bf16.vlgmr.msra.gmra.mrb[12].mxu1 %vm579_vm2, %v602_v48  ;;  %v2164_v48 = vld [vmem:[#allocation8 + $0x8] ss:$12 sps:$4 sm:$0xff]  }
 0x40b   :  { %1952 = vmatpush3.bf16.msra.mxu1 %v655_v49  ;;  %1953 = vmatprep.mubr.msk.bf16.mxu1 %vm2393_vm0, %v2392_v0 }
 0x40c   :  { %1977 = vmatprep.subr.bf16.mxu1 %v2392_v0 }
 0x40d   :  { %v2199_v50 = vpop.eup %2198 }
 0x40e   :  { %v601_v51 = vmul.f32 %v2199_v50, %v2195_v36  ;;  %v2165_v50 = vld [vmem:[#allocation8 + $0x20] ss:$12 sps:$4 sm:$0xff]  }
 0x410   :  { %v603_v52 = vpack.c.bf16 %v601_v51, %v601_v51  ;;  %v2166_v51 = vld [vmem:[#allocation8 + $0x38] ss:$12 sps:$4 sm:$0xff]  }
 0x412   :  { %1954 = vmatmul.mubr.msk.bf16.vlgmr.msra.gmra.mrb[16].mxu1 %vm579_vm2, %v603_v52  ;;  %v2167_v52 = vld [vmem:[#allocation8 + $0x50] ss:$12 sps:$4 sm:$0xff]  }
 0x413   :  { %1993 = vmatprep.mubr.msk.bf16.mxu1 %vm2393_vm0, %v2392_v0  ;;  %1978 = vmatpush3.bf16.msra.mxu1 %v2148_v4  ;;  %v1710_v4 = vld [vmem:[%s2741_s5] ss:$0 sm:$0xff] }
 0x414   :  { %1979 = vmatprep.subr.bf16.mxu1 %v2392_v0 }
 0x4dd   :  { %v645_v56 = vpop.f32.mrb[12].mxu1 }
 0x4de   :  { %v1949_v57 = vpop.f32.mrb[13].mxu1 }
 0x4df   :  { %v648_v58 = vpop.f32.mrb[14].mxu1  ;;  %v1721_v57 = vld [vmem:[%s2741_s5 + $0x1] ss:$0 sm:$0xff] }
 0x4e0   :  { %v1950_v59 = vpop.f32.mrb[15].mxu1 }
 0x4e5   :  { %v691_v60 = vpop.f32.mrb[16].mxu1 }
 0x4e6   :  { %v697_v61 = vpack.c.bf16 %v691_v60, %v645_v56  ;;  %v1955_v62 = vpop.f32.mrb[17].mxu1  ;;  %v2171_v56 = vld [vmem:[#allocation8 + $0xb0] ss:$12 sps:$4 sm:$0xff]  }
 0x4e7   :  { %v694_v63 = vpop.f32.mrb[18].mxu1 }
 0x4e8   :  { %v1956_v3 = vpop.f32.mrb[19].mxu1  ;;  %1974 = vmatmul.mubr.bf16.vlgmr.msra.gmra.mrb[8].mxu0 %v697_v61 }
 0x4e9   :  { %2013 = vmatprep.mubr.msk.bf16.mxu0 %vm2393_vm0, %v2392_v0  ;;  %1998 = vmatpush3.bf16.msra.mxu0 %v2149_v5 }
 0x4ea   :  { %1999 = vmatprep.subr.bf16.mxu0 %v2392_v0 }
 0x4ed   :  { %2000 = vmatpush3.bf16.msra.mxu0 %v2151_v14 }
 0x4ee   :  { %2001 = vmatprep.subr.bf16.mxu0 %v2392_v0 }
 0x4f1   :  { %2002 = vmatpush3.bf16.msra.mxu0 %v2153_v15 }
 0x4f2   :  { %2003 = vmatprep.subr.bf16.mxu0 %v2392_v0 }
 0x4f5   :  { %2004 = vmatpush3.bf16.msra.mxu0 %v2155_v17 }
 0x4f6   :  { %2005 = vmatprep.subr.bf16.mxu0 %v2392_v0 }
 0x4f9   :  { %2006 = vmatpush3.bf16.msra.mxu0 %v2157_v19 }
 0x4fa   :  { %2007 = vmatprep.subr.bf16.mxu0 %v2392_v0 }
 0x4fd   :  { %2008 = vmatpush3.bf16.msra.mxu0 %v2159_v21 }
 0x4fe   :  { %2009 = vmatprep.subr.bf16.mxu0 %v2392_v0 }
 0x501   :  { %2010 = vmatpush3.bf16.msra.mxu0 %v2161_v23 }
 0x502   :  { %2011 = vmatprep.subr.bf16.mxu0 %v2392_v0 }
 0x505   :  { %2012 = vmatpush3.bf16.msra.mxu0 %v2163_v25 }
 0x506   :  { %2037 = vmatprep.subr.bf16.mxu0 %v2392_v0 }
 0x5bb   :  { %v796_v6 = vpop.f32.mrb[8].mxu0 }
 0x5bc   :  { %v2626_v7 = vadd.f32 %v796_v6, %v2538_v1  ;;  %v1975_v8 = vpop.f32.mrb[9].mxu0  ;;  %v2150_v1 = vld [vmem:[#allocation8 + $0x18] ss:$12 sps:$4 sm:$0xff]  }
 0x5bd   :  { %v799_v9 = vpop.f32.mrb[10].mxu0  ;;  %1980 = vmatpush3.bf16.msra.mxu1 %v2150_v1 }
 0x5be   :  { %v2629_v10 = vadd.f32 %v799_v9, %v2540_v2  ;;  %805 = vadd.xlane.f32.xlu0 %v2626_v7  ;;  %v1976_v11 = vpop.f32.mrb[11].mxu0  ;;  %v811_v12 = vmul.f32 %v2626_v7, %v2626_v7  ;;  %1981 = vmatprep.subr.bf16.mxu1 %v2392_v0  ;;  %v2152_v2 = vld [vmem:[#allocation8 + $0x30] ss:$12 sps:$4 sm:$0xff]  }
 0x5c0   :  { %807 = vadd.xlane.f32.xlu1 %v2629_v10  ;;  %v812_v13 = vmul.f32 %v2629_v10, %v2629_v10 }
 0x5c1   :  { %1982 = vmatpush3.bf16.msra.mxu1 %v2152_v2  ;;  %v1732_v2 = vld [vmem:[%s2741_s5 + $0x2] ss:$0 sm:$0xff] }
 0x5c2   :  { %813 = vadd.xlane.f32.xlu0 %v811_v12  ;;  %1983 = vmatprep.subr.bf16.mxu1 %v2392_v0 }
 0x5c4   :  { %815 = vadd.xlane.f32.xlu1 %v812_v13 }
 0x5c5   :  { %1984 = vmatpush3.bf16.msra.mxu1 %v2154_v16 }
 0x5c6   :  { %1985 = vmatprep.subr.bf16.mxu1 %v2392_v0 }
 0x5c9   :  { %1986 = vmatpush3.bf16.msra.mxu1 %v2156_v18 }
 0x5ca   :  { %1987 = vmatprep.subr.bf16.mxu1 %v2392_v0 }
 0x5cd   :  { %1988 = vmatpush3.bf16.msra.mxu1 %v2158_v20 }
 0x5ce   :  { %1989 = vmatprep.subr.bf16.mxu1 %v2392_v0 }
 0x5d1   :  { %1990 = vmatpush3.bf16.msra.mxu1 %v2160_v22 }
 0x5d2   :  { %1991 = vmatprep.subr.bf16.mxu1 %v2392_v0 }
 0x5d5   :  { %1992 = vmatpush3.bf16.msra.mxu1 %v2162_v24 }
 0x5d6   :  { %2017 = vmatprep.subr.bf16.mxu1 %v2392_v0 }
 0x64b   :  { %v806_v26 = vpop.xlane.xlu0 %805 }
 0x64c   :  { %v809_v27 = vmul.f32 0.0625, %v806_v26 }
 0x64d   :  { %v808_v28 = vpop.xlane.xlu1 %807 }
 0x64e   :  { %v810_v29 = vmul.f32 0.0625, %v808_v28  ;;  %v819_v31 = vmul.f32 %v809_v27, %v809_v27  ;;  %v825_v43 = vsub.f32 %v2626_v7, %v809_v27 }
 0x64f   :  { %v814_v30 = vpop.xlane.xlu0 %813 }
 0x650   :  { %v817_v32 = vmul.f32 0.0625, %v814_v30  ;;  %v820_v34 = vmul.f32 %v810_v29, %v810_v29  ;;  %v826_v44 = vsub.f32 %v2629_v10, %v810_v29 }
 0x651   :  { %v816_v33 = vpop.xlane.xlu1 %815 }
 0x652   :  { %v821_v35 = vsub.f32 %v817_v32, %v819_v31  ;;  %v818_v36 = vmul.f32 0.0625, %v816_v33 }
 0x654   :  { %v823_v37 = vmax.f32 %v821_v35, 0.0  ;;  %v822_v38 = vsub.f32 %v818_v36, %v820_v34 }
 0x656   :  { %v827_v39 = vadd.f32 1e-05, %v823_v37  ;;  %v824_v40 = vmax.f32 %v822_v38, 0.0 }
 0x658   :  { %2200 = vrsqrt.f32 %v827_v39  ;;  %v828_v41 = vadd.f32 1e-05, %v824_v40 }
 0x65a   :  { %2202 = vrsqrt.f32 %v828_v41 }
 0x662   :  { %v2201_v42 = vpop.eup %2200 }
 0x663   :  { %v831_v46 = vmul.f32 %v2201_v42, %v825_v43 }
 0x664   :  { %v2203_v45 = vpop.eup %2202 }
 0x665   :  { %v832_v47 = vmul.f32 %v2203_v45, %v826_v44 }
 0x667   :  { %v833_v49 = vpack.c.bf16 %v832_v47, %v831_v46 }
 0x669   :  { %1994 = vmatmul.mubr.bf16.vlgmr.msra.gmra.mrb[20].mxu1 %v833_v49  ;;  %2014 = vmatmul.mubr.bf16.vlgmr.msra.gmra.mrb[12].mxu0 %v833_v49 }
 0x66a   :  { %2018 = vmatpush3.bf16.msra.mxu1 %v2164_v48  ;;  %2033 = vmatprep.mubr.msk.bf16.mxu1 %vm2393_vm0, %v2392_v0 }
 0x66b   :  { %2019 = vmatprep.subr.bf16.mxu1 %v2392_v0  ;;  %2039 = vmatprep.mubr.msk.bf16.mxu0 %vm2393_vm0, %v2392_v0 }
 0x66e   :  { %2020 = vmatpush3.bf16.msra.mxu1 %v2165_v50  ;;  %v2172_v50 = vld [vmem:[#allocation10] sm:$0xff]  }
 0x66f   :  { %2021 = vmatprep.subr.bf16.mxu1 %v2392_v0 }
 0x672   :  { %2022 = vmatpush3.bf16.msra.mxu1 %v2166_v51 }
 0x673   :  { %2023 = vmatprep.subr.bf16.mxu1 %v2392_v0 }
 0x676   :  { %2024 = vmatpush3.bf16.msra.mxu1 %v2167_v52 }
 0x677   :  { %2025 = vmatprep.subr.bf16.mxu1 %v2392_v0 }
 0x67a   :  { %2026 = vmatpush3.bf16.msra.mxu1 %v2168_v53 }
 0x67b   :  { %2027 = vmatprep.subr.bf16.mxu1 %v2392_v0 }
 0x67e   :  { %2028 = vmatpush3.bf16.msra.mxu1 %v2169_v54  ;;  %v2173_v54 = vld [vmem:[#allocation10 + $0x8] sm:$0xff]  }
 0x67f   :  { %2029 = vmatprep.subr.bf16.mxu1 %v2392_v0 }
 0x682   :  { %2030 = vmatpush3.bf16.msra.mxu1 %v2170_v55  ;;  %v2174_v55 = vld [vmem:[#allocation10 + $0x10] sm:$0xff]  }
 0x683   :  { %2031 = vmatprep.subr.bf16.mxu1 %v2392_v0 }
 0x686   :  { %2032 = vmatpush3.bf16.msra.mxu1 %v2171_v56  ;;  %v2175_v56 = vld [vmem:[#allocation10 + $0x18] sm:$0xff]  }
 0x687   :  { %2043 = vmatprep.subr.bf16.mxu1 %v2392_v0 }
 0x689   :  { %2034 = vmatmul.mubr.bf16.vlgmr.msra.gmra.mrb[24].mxu1 %v833_v49 }
 0x68a   :  { %2045 = vmatprep.mubr.msk.bf16.mxu1 %vm2393_vm0, %v2392_v0 }
 0x73c   :  { %v937_v58 = vpop.f32.mrb[20].mxu1  ;;  %v1055_v59 = vpop.f32.mrb[12].mxu0 }
 0x73d   :  { %v1056_v60 = vadd.f32 %v1721_v57, %v1055_v59  ;;  %v1995_v61 = vpop.f32.mrb[21].mxu1  ;;  %v2015_v62 = vpop.f32.mrb[13].mxu0  ;;  %v938_v12 = vadd.f32 %v1710_v4, %v937_v58  ;;  %v2177_v58 = vld [vmem:[#allocation10 + $0x28] sm:$0xff]   ;;  %v2178_v59 = vld [vmem:[#allocation10 + $0x30] sm:$0xff]  }
 0x73e   :  { %v940_v63 = vpop.f32.mrb[22].mxu1  ;;  %v1058_v3 = vpop.f32.mrb[14].mxu0  ;;  %v2180_v61 = vld [vmem:[#allocation11] sm:$0xff]   ;;  %v2181_v62 = vld [vmem:[#allocation11 + $0x8] sm:$0xff]  }
 0x73f   :  { %v1772_v5 = vpack.c.bf16 %v1056_v60, %v1056_v60  ;;  %v1059_v6 = vadd.f32 %v1721_v57, %v1058_v3  ;;  %v1996_v8 = vpop.f32.mrb[23].mxu1  ;;  %v2016_v9 = vpop.f32.mrb[15].mxu0  ;;  %v941_v13 = vadd.f32 %v1710_v4, %v940_v63  ;;  %v1770_v1 = vpack.c.bf16 %v938_v12, %v938_v12  ;;  %v2176_v57 = vld [vmem:[#allocation10 + $0x20] sm:$0xff]   ;;  %v2179_v60 = vld [vmem:[#allocation10 + $0x38] sm:$0xff]   ;;  %v2182_v63 = vld [vmem:[#allocation11 + $0x10] sm:$0xff]  }
 0x740   :  { %v2183_v3 = vld [vmem:[#allocation11 + $0x18] sm:$0xff]   ;;  %v2184_v4 = vld [vmem:[#allocation11 + $0x20] sm:$0xff]  }
 0x741   :  { %v1773_v11 = vpack.c.bf16 %v1059_v6, %v1059_v6  ;;  %2038 = vmatpush3.bf16.xpose.msra.mxu0 %v1772_v5  ;;  %v1771_v14 = vpack.c.bf16 %v941_v13, %v941_v13  ;;  %v2185_v5 = vld [vmem:[#allocation11 + $0x28] sm:$0xff]  }
 0x742   :  { %2049 = vmatprep.subr.bf16.mxu0 %v2392_v0 }
 0x743   :  { %2044 = vmatpush3.bf16.xpose.msra.mxu1 %v1773_v11 }
 0x744   :  { %2055 = vmatprep.subr.bf16.mxu1 %v2392_v0 }
 0x748   :  { %2040 = vmatmul.mubr.bf16.vlgmr.msra.gmra.mrb[16].mxu0 %v1770_v1 }
 0x749   :  { %2051 = vmatprep.mubr.msk.bf16.mxu0 %vm2393_vm0, %v2392_v0 }
 0x74a   :  { %2046 = vmatmul.mubr.bf16.vlgmr.msra.gmra.mrb[28].mxu1 %v1771_v14 }
 0x74b   :  { %2057 = vmatprep.mubr.msk.bf16.mxu1 %vm2393_vm0, %v2392_v0 }
 0x75c   :  { %v1173_v15 = vpop.f32.mrb[24].mxu1 }
 0x75d   :  { %v1174_v16 = vadd.f32 %v1732_v2, %v1173_v15  ;;  %v2035_v17 = vpop.f32.mrb[25].mxu1  ;;  %v2186_v15 = vld [vmem:[#allocation11 + $0x30] sm:$0xff]  }
 0x75e   :  { %v1176_v18 = vpop.f32.mrb[26].mxu1 }
 0x75f   :  { %v1774_v19 = vpack.c.bf16 %v1174_v16, %v1174_v16  ;;  %v1177_v20 = vadd.f32 %v1732_v2, %v1176_v18  ;;  %v2036_v21 = vpop.f32.mrb[27].mxu1  ;;  %v2187_v16 = vld [vmem:[#allocation11 + $0x38] sm:$0xff]  }
 0x761   :  { %v1294_v22 = vsel %vm607_vm1, %v1774_v19, 0  ;;  %v1775_v23 = vpack.c.bf16 %v1177_v20, %v1177_v20 }
 0x762   :  { %2050 = vmatpush3.bf16.msra.mxu0 %v1294_v22 }
 0x763   :  { %v1340_v24 = vsel %vm607_vm1, %v1775_v23, 0  ;;  %2061 = vmatprep.subr.bf16.mxu0 %v2392_v0 }
 0x764   :  { %2056 = vmatpush3.bf16.msra.mxu1 %v1340_v24  ;;  %v1753_v24 = vld [vmem:[%s2744_s8] ss:$0 sm:$0xff] }
 0x765   :  { %2081 = vmatprep.subr.bf16.mxu1 %v2392_v0 }
 0x81b   :  { %v1220_v25 = vpop.f32.mrb[16].mxu0 }
 0x81c   :  { %v2041_v26 = vpop.f32.mrb[17].mxu0  ;;  %v1266_v27 = vsel %vm579_vm2, %v1220_v25, -inf }
 0x81d   :  { %v1260_v28 = vpop.f32.mrb[28].mxu1  ;;  %1267 = vmax.xlane.f32.xlu0 %v1266_v27  ;;  %v1223_v29 = vpop.f32.mrb[18].mxu0 }
 0x81e   :  { %v2042_v30 = vpop.f32.mrb[19].mxu0  ;;  %v2047_v31 = vpop.f32.mrb[29].mxu1  ;;  %v1269_v32 = vsel %vm579_vm2, %v1260_v28, -inf }
 0x81f   :  { %1270 = vmax.xlane.f32.xlu1 %v1269_v32  ;;  %v1263_v33 = vpop.f32.mrb[30].mxu1 }
 0x820   :  { %v2048_v34 = vpop.f32.mrb[31].mxu1 }
 0x8aa   :  { %v1268_v35 = vpop.xlane.xlu0 %1267 }
 0x8ab   :  { %v1272_v36 = vsub.f32 %v1220_v25, %v1268_v35 }
 0x8ac   :  { %v1271_v37 = vpop.xlane.xlu1 %1270 }
 0x8ad   :  { %v1274_v38 = vmul.f32 1.442695, %v1272_v36  ;;  %v1273_v39 = vsub.f32 %v1260_v28, %v1271_v37 }
 0x8af   :  { %2204 = vpow2.f32 %v1274_v38  ;;  %v1276_v40 = vmul.f32 1.442695, %v1273_v39 }
 0x8b1   :  { %2206 = vpow2.f32 %v1276_v40 }
 0x8b9   :  { %v2205_v41 = vpop.eup %2204 }
 0x8ba   :  { %v1278_v42 = vsel %vm579_vm2, %v2205_v41, 0.0 }
 0x8bb   :  { %v2207_v43 = vpop.eup %2206  ;;  %1279 = vadd.xlane.f32.xlu0 %v1278_v42 }
 0x8bc   :  { %v1281_v44 = vsel %vm579_vm2, %v2207_v43, 0.0 }
 0x8bd   :  { %1282 = vadd.xlane.f32.xlu1 %v1281_v44 }
 0x948   :  { %v1280_v45 = vpop.xlane.xlu0 %1279 }
 0x949   :  { %2208 = vrcp.f32 %v1280_v45 }
 0x94a   :  { %v1283_v46 = vpop.xlane.xlu1 %1282 }
 0x94b   :  { %2210 = vrcp.f32 %v1283_v46 }
 0x953   :  { %v2209_v47 = vpop.eup %2208 }
 0x954   :  { %v1286_v48 = vmul.f32 %v2209_v47, %v2205_v41 }
 0x955   :  { %v2211_v49 = vpop.eup %2210 }
 0x956   :  { %v1287_v51 = vmul.f32 %v2211_v49, %v2207_v43  ;;  %v1288_v52 = vpack.c.bf16 %v1286_v48, %v1286_v48 }
 0x958   :  { %2052 = vmatmul.mubr.msk.bf16.vlgmr.msra.gmra.mrb[20].mxu0 %vm579_vm2, %v1288_v52  ;;  %v1289_v53 = vpack.c.bf16 %v1287_v51, %v1287_v51 }
 0x959   :  { %2062 = vmatpush3.bf16.msra.mxu0 %v2172_v50  ;;  %2077 = vmatprep.mubr.msk.bf16.mxu0 %vm2393_vm0, %v2392_v0  ;;  %v1762_v50 = vld [vmem:[%s2744_s8 + $0x1] ss:$0 sm:$0xff] }
 0x95a   :  { %2058 = vmatmul.mubr.msk.bf16.vlgmr.msra.gmra.mrb[32].mxu1 %vm579_vm2, %v1289_v53  ;;  %2063 = vmatprep.subr.bf16.mxu0 %v2392_v0 }
 0x95b   :  { %2097 = vmatprep.mubr.msk.bf16.mxu1 %vm2393_vm0, %v2392_v0  ;;  %2082 = vmatpush3.bf16.msra.mxu1 %v2180_v61 }
 0x95c   :  { %2083 = vmatprep.subr.bf16.mxu1 %v2392_v0 }
 0x95d   :  { %2064 = vmatpush3.bf16.msra.mxu0 %v2173_v54  ;;  %v1763_v54 = vld [vmem:[%s2744_s8 + $0x2] ss:$0 sm:$0xff] }
 0x95e   :  { %2065 = vmatprep.subr.bf16.mxu0 %v2392_v0 }
 0x95f   :  { %2084 = vmatpush3.bf16.msra.mxu1 %v2181_v62 }
 0x960   :  { %2085 = vmatprep.subr.bf16.mxu1 %v2392_v0 }
 0x961   :  { %2066 = vmatpush3.bf16.msra.mxu0 %v2174_v55 }
 0x962   :  { %2067 = vmatprep.subr.bf16.mxu0 %v2392_v0 }
 0x963   :  { %2086 = vmatpush3.bf16.msra.mxu1 %v2182_v63 }
 0x964   :  { %2087 = vmatprep.subr.bf16.mxu1 %v2392_v0 }
 0x965   :  { %2068 = vmatpush3.bf16.msra.mxu0 %v2175_v56 }
 0x966   :  { %2069 = vmatprep.subr.bf16.mxu0 %v2392_v0 }
 0x967   :  { %2088 = vmatpush3.bf16.msra.mxu1 %v2183_v3 }
 0x968   :  { %2089 = vmatprep.subr.bf16.mxu1 %v2392_v0 }
 0x969   :  { %2070 = vmatpush3.bf16.msra.mxu0 %v2176_v57 }
 0x96a   :  { %2071 = vmatprep.subr.bf16.mxu0 %v2392_v0 }
 0x96b   :  { %2090 = vmatpush3.bf16.msra.mxu1 %v2184_v4 }
 0x96c   :  { %2091 = vmatprep.subr.bf16.mxu1 %v2392_v0 }
 0x96d   :  { %2072 = vmatpush3.bf16.msra.mxu0 %v2177_v58 }
 0x96e   :  { %2073 = vmatprep.subr.bf16.mxu0 %v2392_v0 }
 0x96f   :  { %2092 = vmatpush3.bf16.msra.mxu1 %v2185_v5 }
 0x970   :  { %2093 = vmatprep.subr.bf16.mxu1 %v2392_v0 }
 0x971   :  { %2074 = vmatpush3.bf16.msra.mxu0 %v2178_v59 }
 0x972   :  { %2075 = vmatprep.subr.bf16.mxu0 %v2392_v0 }
 0x973   :  { %2094 = vmatpush3.bf16.msra.mxu1 %v2186_v15 }
 0x974   :  { %2095 = vmatprep.subr.bf16.mxu1 %v2392_v0 }
 0x975   :  { %2076 = vmatpush3.bf16.msra.mxu0 %v2179_v60 }
 0x977   :  { %2096 = vmatpush3.bf16.msra.mxu1 %v2187_v16 }
 0xa2b   :  { %v1330_v6 = vpop.f32.mrb[20].mxu0 }
 0xa2c   :  { %v2053_v8 = vpop.f32.mrb[21].mxu0 }
 0xa2d   :  { %v1333_v9 = vpop.f32.mrb[22].mxu0  ;;  %v1376_v11 = vpop.f32.mrb[32].mxu1 }
 0xa2e   :  { %v1382_v12 = vpack.c.bf16 %v1376_v11, %v1330_v6  ;;  %v2054_v13 = vpop.f32.mrb[23].mxu0  ;;  %v2059_v1 = vpop.f32.mrb[33].mxu1 }
 0xa2f   :  { %v1379_v14 = vpop.f32.mrb[34].mxu1 }
 0xa30   :  { %v2060_v2 = vpop.f32.mrb[35].mxu1  ;;  %2078 = vmatmul.mubr.bf16.vlgmr.msra.gmra.mrb[24].mxu0 %v1382_v12 }
 0xb03   :  { %v1481_v17 = vpop.f32.mrb[24].mxu0 }
 0xb04   :  { %v2079_v18 = vpop.f32.mrb[25].mxu0  ;;  %v1488_v20 = vadd.f32 %v1481_v17, %v2626_v7 }
 0xb05   :  { %v1484_v19 = vpop.f32.mrb[26].mxu0 }
 0xb06   :  { %v1489_v21 = vadd.f32 %v1484_v19, %v2629_v10  ;;  %v2080_v22 = vpop.f32.mrb[27].mxu0 }
 0xb08   :  { %v1490_v23 = vpack.c.bf16 %v1489_v21, %v1488_v20 }
 0xb0a   :  { %2098 = vmatmul.mubr.bf16.vlgmr.msra.gmra.mrb[36].mxu1 %v1490_v23 }
 0xbdd   :  { %v1594_v25 = vpop.f32.mrb[36].mxu1 }
 0xbde   :  { %v1595_v26 = vadd.f32 %v1753_v24, %v1594_v25  ;;  %v2099_v27 = vpop.f32.mrb[37].mxu1 }
 0xbdf   :  { %v1597_v0 = vpop.f32.mrb[38].mxu1 }
 0xbe0   :  { %v1601_v28 = vadd.f32 %v1595_v26, %v1488_v20  ;;  %v1598_v29 = vadd.f32 %v1753_v24, %v1597_v0  ;;  %v2100_v30 = vpop.f32.mrb[39].mxu1 }
 0xbe2   :  { %v1602_v31 = vadd.f32 %v1598_v29, %v1489_v21  ;;  %1603 = vadd.xlane.f32.xlu0 %v1601_v28  ;;  %v1609_v7 = vmul.f32 %v1601_v28, %v1601_v28 }
 0xbe4   :  { %1605 = vadd.xlane.f32.xlu1 %v1602_v31  ;;  %v1610_v10 = vmul.f32 %v1602_v31, %v1602_v31 }
 0xbe6   :  { %1611 = vadd.xlane.f32.xlu0 %v1609_v7 }
 0xbe8   :  { %1613 = vadd.xlane.f32.xlu1 %v1610_v10 }
 0xc6f   :  { %v1604_v32 = vpop.xlane.xlu0 %1603 }
 0xc70   :  { %v1607_v33 = vmul.f32 0.0625, %v1604_v32 }
 0xc71   :  { %v1606_v34 = vpop.xlane.xlu1 %1605 }
 0xc72   :  { %v1608_v35 = vmul.f32 0.0625, %v1606_v34  ;;  %v1617_v37 = vmul.f32 %v1607_v33, %v1607_v33  ;;  %v1623_v48 = vsub.f32 %v1601_v28, %v1607_v33 }
 0xc73   :  { %v1612_v36 = vpop.xlane.xlu0 %1611 }
 0xc74   :  { %v1615_v38 = vmul.f32 0.0625, %v1612_v36  ;;  %v1618_v40 = vmul.f32 %v1608_v35, %v1608_v35  ;;  %v1624_v51 = vsub.f32 %v1602_v31, %v1608_v35 }
 0xc75   :  { %v1614_v39 = vpop.xlane.xlu1 %1613 }
 0xc76   :  { %v1619_v41 = vsub.f32 %v1615_v38, %v1617_v37  ;;  %v1616_v42 = vmul.f32 0.0625, %v1614_v39 }
 0xc78   :  { %v1621_v43 = vmax.f32 %v1619_v41, 0.0  ;;  %v1620_v44 = vsub.f32 %v1616_v42, %v1618_v40 }
 0xc7a   :  { %v1625_v45 = vadd.f32 1e-05, %v1621_v43  ;;  %v1622_v46 = vmax.f32 %v1620_v44, 0.0 }
 0xc7c   :  { %2212 = vrsqrt.f32 %v1625_v45  ;;  %v1626_v47 = vadd.f32 1e-05, %v1622_v46 }
 0xc7e   :  { %2214 = vrsqrt.f32 %v1626_v47 }
 0xc86   :  { %v2213_v49 = vpop.eup %2212 }
 0xc87   :  { %v1629_v52 = vmul.f32 %v2213_v49, %v1623_v48 }
 0xc88   :  { %v2215_v53 = vpop.eup %2214 }
 0xc89   :  { %v1630_v55 = vmul.f32 %v2215_v53, %v1624_v51  ;;  %v1636_v56 = vmul.f32 %v1762_v50, %v1629_v52 }
 0xc8b   :  { %v1637_v57 = vmul.f32 %v1762_v50, %v1630_v55  ;;  %v1643_v58 = vadd.f32 %v1763_v54, %v1636_v56 }
 0xc8d   :  { %v1644_v59 = vadd.f32 %v1763_v54, %v1637_v57  ;;  %1645 = vst [vmem:[#allocation13] sm:$0xff] %v1643_v58 }
 0xc8f   :  { %1646 = vst [vmem:[#allocation13 + $0x8] sm:$0xff] %v1644_v59 }
 0xc90   :  { %2359 = shalt.err (!%p2356_p10)
}
 0xc91   :  { %s2360_s8 = scalar_lea.hbm %s2745_s9, 256 }
 0xc92   :  { %p2361_p11 = scmp.ne.s32.totalorder %s2745_s9, %s2360_s8  ;;  %p2364_p12 = scmp.lt.u32.totalorder %s2360_s8, %s2745_s9 }
 0xc94   :  { %p2366_p13 = pnand %p2364_p12, %p2361_p11 }
 0xc96   :  { %2369 = shalt.err (!%p2366_p13)
}
 0xc97   :  { %1658 = dma.vmem_to_hbm [thread:$0]  %s1653_s1, 256, %s2745_s9, [#allocation4], %s2385_s4, %s2385_s4, %s2386_s19  }
 0xc98   :  { %2378 = dma.done.wait [#allocation4], 256  }
 0xc99   :  { %2379 = vsyncadd [#allocation4], 4294967040 }
 0xc9a   :  { %1662 = vsyncpa [#allocation3], 1 }
 0xc9b   :  { %1663 = vsyncpa [#allocation6], 1 }
 0xc9c   :  { %1664 = vsyncpa [#allocation9], 1 }
 0xc9d   :  { %1665 = vsyncpa [#allocation12], 1 }
 0xc9e   :  { %1666 = vsyncpa [#allocation4], 1 }

</bundles_post_ra>
